<compile_context>
chip_gen: v6e
topology: v6e:2x2x1
jax: 0.10.0
libtpu: 0.0.40
codegen_flags: <defaults>
</compile_context>

<pallas_src>
import jax
import jax.numpy as jnp
from jax.experimental import pallas as pl
from jax.experimental.pallas import tpu as pltpu


def _round_up(x, m):
    return (x + m - 1) // m * m


def _cdiv(a, b):
    return (a + b - 1) // b


# ----------------------------------------------------------------------------
# Parameter construction (deterministic, synthetic — mirrors ICM.__init__)
# ----------------------------------------------------------------------------
def init_linear(key, d_in, d_out):
    kw, kb = jax.random.split(key)
    scale = 1.0 / jnp.sqrt(jnp.float32(d_in))
    w = jax.random.uniform(kw, (d_in, d_out), jnp.float32, -scale, scale)
    b = jax.random.uniform(kb, (1, d_out), jnp.float32, -scale, scale)
    return w, b


def init_icm_params(key, state_dim, action_dim,
                    feature_sizes, inverse_hidden_sizes, forward_hidden_sizes):
    params = {"feature": [], "inverse": [], "forward": []}
    d = state_dim
    for size in feature_sizes:
        key, sub = jax.random.split(key)
        params["feature"].append(init_linear(sub, d, size))
        d = size
    feat_dim = d
    d = 2 * feat_dim
    for size in inverse_hidden_sizes:
        key, sub = jax.random.split(key)
        params["inverse"].append(init_linear(sub, d, size))
        d = size
    key, sub = jax.random.split(key)
    params["inverse"].append(init_linear(sub, d, action_dim))
    d = feat_dim + action_dim
    for size in forward_hidden_sizes:
        key, sub = jax.random.split(key)
        params["forward"].append(init_linear(sub, d, size))
        d = size
    key, sub = jax.random.split(key)
    params["forward"].append(init_linear(sub, d, feat_dim))
    return params


# ----------------------------------------------------------------------------
# Packing: pad every layer width to 128 lanes, split the "concat" weights,
# collapse all weights into one bf16 slab and all biases into one f32 slab.
# ----------------------------------------------------------------------------
def pack_icm_params(params, state_dim, action_dim, compute_dtype=jnp.bfloat16):
    feat_dim = params["forward"][-1][0].shape[1]
    widths = [state_dim, action_dim, feat_dim]
    for grp in ("feature", "inverse", "forward"):
        widths += [w.shape[1] for (w, _) in params[grp]]
    P = max(128, _round_up(max(widths), 128))

    w_slabs, b_rows = [], []

    def pad_w(w):
        out = jnp.zeros((P, P), jnp.float32)
        return out.at[: w.shape[0], : w.shape[1]].set(w)

    def pad_b(b):
        out = jnp.zeros((P,), jnp.float32)
        return out.at[: b.shape[-1]].set(b.reshape(-1))

    def add_w(w):
        w_slabs.append(pad_w(w))
        return len(w_slabs) - 1

    def add_b(b):
        b_rows.append(pad_b(b))
        return len(b_rows) - 1

    sched = {"feature": [], "inverse_first": None, "inverse_rest": [],
             "forward_first": None, "forward_rest": []}

    # feature MLP: Linear + ReLU per layer
    for (w, b) in params["feature"]:
        sched["feature"].append((add_w(w), add_b(b)))

    # inverse MLP: first weight split along rows into (phi_s | phi_ns) halves
    inv = params["inverse"]
    w0, b0 = inv[0]
    sched["inverse_first"] = (add_w(w0[:feat_dim]), add_w(w0[feat_dim:]),
                              add_b(b0), len(inv) > 1)
    for li, (w, b) in enumerate(inv[1:]):
        sched["inverse_rest"].append((add_w(w), add_b(b), li < len(inv) - 2))

    # forward MLP: first weight split along rows into (phi_s | action_onehot)
    fwd = params["forward"]
    w0, b0 = fwd[0]
    sched["forward_first"] = (add_w(w0[:feat_dim]), add_w(w0[feat_dim:]),
                              add_b(b0), len(fwd) > 1)
    for li, (w, b) in enumerate(fwd[1:]):
        sched["forward_rest"].append((add_w(w), add_b(b), li < len(fwd) - 2))

    w_packed = jnp.stack(w_slabs).astype(compute_dtype)          # (n_w, P, P)
    n_b = len(b_rows)
    b_packed = jnp.zeros((_round_up(n_b, 8), P), jnp.float32)
    b_packed = b_packed.at[:n_b].set(jnp.stack(b_rows))          # (n_b_pad, P)

    return {"w": w_packed, "b": b_packed, "sched": sched, "P": P,
            "feat_dim": feat_dim, "state_dim": state_dim,
            "action_dim": action_dim}


# ----------------------------------------------------------------------------
# Pallas kernel (statically unrolled over the layer schedule)
# ----------------------------------------------------------------------------
def make_icm_kernel(sched):
    feature = tuple(sched["feature"])
    inv_first = sched["inverse_first"]
    inv_rest = tuple(sched["inverse_rest"])
    fwd_first = sched["forward_first"]
    fwd_rest = tuple(sched["forward_rest"])

    def kernel(sn_ref, act_ref, w_ref, b_ref, out_ref):
        bb = sn_ref.shape[1]
        Sp = sn_ref.shape[2]          # padded state width (multiple of 16)
        Ap = act_ref.shape[1]         # padded action width (multiple of 16)

        # bf16 operands straight from VMEM (no f32 upcast of the input block);
        # MXU accumulates in f32, element-wise math stays f32 (v5e-safe).
        sn = sn_ref[...].reshape(2 * bb, Sp)   # stacked [state ; next_state]
        act = act_ref[...]                     # (bb, Ap) padded one-hot action

        def mm(a, wi, k=None):
            w = w_ref[wi] if k is None else w_ref[wi, :k, :]
            return jnp.dot(a.astype(w.dtype), w,
                           preferred_element_type=jnp.float32)

        def bias(bi):
            return b_ref[bi:bi + 1, :]         # (1, P), broadcasts over rows

        # ---- shared feature MLP: ONE pass over the stacked (2*bb, Sp) rows --
        h = sn
        for li, (wi, bi) in enumerate(feature):
            k = Sp if li == 0 else None        # narrow contraction on layer 0
            h = jnp.maximum(mm(h, wi, k) + bias(bi), 0.0)
        phi_s = h[0:bb, :]
        phi_ns = h[bb:2 * bb, :]

        # ---- inverse model: concat replaced by split-weight accumulate ------
        wa, wb, bi0, relu0 = inv_first
        z = mm(phi_s, wa) + mm(phi_ns, wb) + bias(bi0)
        if relu0:
            z = jnp.maximum(z, 0.0)
        for (wi, bi, relu) in inv_rest:
            z = mm(z, wi) + bias(bi)
            if relu:
                z = jnp.maximum(z, 0.0)
        pred_action = z

        # ---- forward model: concat replaced by split-weight accumulate ------
        wp, wact, bf0, relu0f = fwd_first
        f = mm(phi_s, wp) + mm(act, wact, Ap) + bias(bf0)
        if relu0f:
            f = jnp.maximum(f, 0.0)
        for (wi, bi, relu) in fwd_rest:
            f = mm(f, wi) + bias(bi)
            if relu:
                f = jnp.maximum(f, 0.0)
        pred_phi_next = f

        # ---- lane-dense (bb, P) unmasked stores into the packed output slab -
        out_ref[0, :, :] = pred_action.astype(out_ref.dtype)
        out_ref[1, :, :] = pred_phi_next.astype(out_ref.dtype)
        out_ref[2, :, :] = phi_ns.astype(out_ref.dtype)

    return kernel


# ----------------------------------------------------------------------------
# Wrapper
# ----------------------------------------------------------------------------
def icm_forward(state, next_state, action_onehot, packed, *,
                block_b=1024, out_dtype=jnp.float32):
    # out_dtype=jnp.bfloat16 halves output HBM writeback if the downstream
    # losses tolerate it; default stays f32 to match the module's outputs.
    w_packed, b_packed, sched = packed["w"], packed["b"], packed["sched"]
    P, feat_dim = packed["P"], packed["feat_dim"]
    compute_dtype = w_packed.dtype

    B, state_dim = state.shape
    action_dim = action_onehot.shape[1]

    # ---- batch tiling --------------------------------------------------
    row_align = 16                                   # bf16 sublane packing
    Bp0 = _round_up(B, row_align)
    n_blocks = max(1, _cdiv(Bp0, _round_up(block_b, row_align)))
    # Prefer >=2 grid blocks for non-tiny batches so both v7x TensorCores get
    # work; on single-core v5e/v6e this only costs one ~0.35us grid step.
    if n_blocks == 1 and Bp0 >= 256:
        n_blocks = 2
    bb = _round_up(_cdiv(Bp0, n_blocks), row_align)
    Bp = bb * n_blocks

    # ---- narrow (not 128-padded) inputs: stacked states + one-hot action ----
    Sp = _round_up(state_dim, 16)
    Ap = _round_up(action_dim, 16)
    sn = jnp.stack([state, next_state]).astype(compute_dtype)   # (2, B, state_dim)
    act = action_onehot.astype(compute_dtype)                   # (B, action_dim)
    if (Bp, Sp) != (B, state_dim):
        sn = jnp.pad(sn, ((0, 0), (0, Bp - B), (0, Sp - state_dim)))
    if (Bp, Ap) != (B, action_dim):
        act = jnp.pad(act, ((0, Bp - B), (0, Ap - action_dim)))

    # ---- compiler params (raise scoped VMEM only when the block needs it) ---
    in_bytes = 2 * (2 * bb * Sp + bb * Ap) * jnp.dtype(compute_dtype).itemsize
    out_bytes = 2 * 3 * bb * P * jnp.dtype(out_dtype).itemsize
    w_bytes = (w_packed.size * jnp.dtype(w_packed.dtype).itemsize
               + b_packed.size * 4)
    need = in_bytes + out_bytes + w_bytes + (4 << 20)     # slack for temps
    cp_kwargs = dict(dimension_semantics=("parallel",))
    if need > (16 << 20):            # beyond v5e's default scoped-VMEM limit
        cp_kwargs["vmem_limit_bytes"] = int(min(need, 56 << 20))

    kernel = make_icm_kernel(sched)

    def build_specs(resident_mode):
        kw = {} if resident_mode is None else {"pipeline_mode": resident_mode}
        return [
            pl.BlockSpec((2, bb, Sp), lambda i: (0, i, 0)),       # states
            pl.BlockSpec((bb, Ap), lambda i: (i, 0)),             # action onehot
            pl.BlockSpec(w_packed.shape, lambda i: (0, 0, 0), **kw),  # weights
            pl.BlockSpec(b_packed.shape, lambda i: (0, 0), **kw),     # biases
        ]

    def call(in_specs):
        return pl.pallas_call(
            kernel,
            out_shape=jax.ShapeDtypeStruct((3, Bp, P), out_dtype),
            grid=(n_blocks,),
            in_specs=in_specs,
            out_specs=pl.BlockSpec((3, bb, P), lambda i: (0, i, 0)),
            compiler_params=pltpu.CompilerParams(**cp_kwargs),
        )(sn, act, w_packed, b_packed)

    try:
        # Weight/bias slabs have constant index_maps: single-buffer them.
        out = call(build_specs(pl.Buffered(1)))
    except Exception:
        # Fallback if pipeline_mode=Buffered(1) is unsupported in this jax.
        out = call(build_specs(None))

    # Plain-slice unpack (no reshape/transpose passes over the slab).
    pred_action = out[0, :B, :action_dim]
    pred_phi_next = out[1, :B, :feat_dim]
    phi_next = out[2, :B, :feat_dim]
    return pred_action, pred_phi_next, phi_next


# ----------------------------------------------------------------------------
# References
# ----------------------------------------------------------------------------
def icm_reference(state, next_state, action_onehot, params):
    """Pure-f32 reference, mirrors the PyTorch forward."""
    def mlp(x, layers, relu_on_last):
        n = len(layers)
        for i, (w, b) in enumerate(layers):
            x = x @ w + b
            if relu_on_last or i < n - 1:
                x = jnp.maximum(x, 0.0)
        return x
    phi_s = mlp(state, params["feature"], True)
    phi_ns = mlp(next_state, params["feature"], True)
    pred_action = mlp(jnp.concatenate([phi_s, phi_ns], axis=1),
                      params["inverse"], False)
    pred_phi_ns = mlp(jnp.concatenate([phi_s, action_onehot], axis=1),
                      params["forward"], False)
    return pred_action, pred_phi_ns, phi_ns


def icm_reference_matched(state, next_state, action_onehot, params, compute_dtype):
    """Reference doing the same bf16-MXU / f32-accumulate math as the kernel."""
    def mm(x, w):
        return jnp.dot(x.astype(compute_dtype), w.astype(compute_dtype),
                       preferred_element_type=jnp.float32)

    def mlp(x, layers, relu_on_last):
        n = len(layers)
        for i, (w, b) in enumerate(layers):
            x = mm(x, w) + b
            if relu_on_last or i < n - 1:
                x = jnp.maximum(x, 0.0)
        return x

    phi_s = mlp(state, params["feature"], True)
    phi_ns = mlp(next_state, params["feature"], True)
    pred_action = mlp(jnp.concatenate([phi_s, phi_ns], axis=1),
                      params["inverse"], False)
    pred_phi_ns = mlp(jnp.concatenate([phi_s, action_onehot], axis=1),
                      params["forward"], False)
    return pred_action, pred_phi_ns, phi_ns


if __name__ == "__main__":
    batch = 8
    state_dim = 32
    action_dim = 8
    feature_sizes = [64, 32]
    inverse_hidden_sizes = [64]
    forward_hidden_sizes = [64]

    key = jax.random.PRNGKey(0)
    key, k_params, k_s, k_ns, k_a = jax.random.split(key, 5)

    params = init_icm_params(k_params, state_dim, action_dim,
                             feature_sizes, inverse_hidden_sizes,
                             forward_hidden_sizes)
    packed = pack_icm_params(params, state_dim, action_dim,
                             compute_dtype=jnp.bfloat16)

    state = jax.random.normal(k_s, (batch, state_dim), jnp.float32)
    next_state = jax.random.normal(k_ns, (batch, state_dim), jnp.float32)
    action_idx = jax.random.randint(k_a, (batch,), 0, action_dim)
    action_onehot = jax.nn.one_hot(action_idx, action_dim, dtype=jnp.float32)

    outs = icm_forward(state, next_state, action_onehot, packed)
    jax.block_until_ready(outs)

    # Tight check vs. a reference doing the same bf16-MXU / f32-accumulate math.
    ref_m = icm_reference_matched(state, next_state, action_onehot, params,
                                  jnp.bfloat16)
    for got, want in zip(outs, ref_m):
        assert got.shape == want.shape
        assert jnp.allclose(got, want, atol=2e-3, rtol=2e-3)

    # Loose sanity check vs. the pure-f32 module semantics (bf16 rounding).
    ref = icm_reference(state, next_state, action_onehot, params)
    for got, want in zip(outs, ref):
        assert got.shape == want.shape
        assert jnp.allclose(got, want, atol=1e-1, rtol=1e-1)

    print("KERNEL_OK")
</pallas_src>

<mosaic_0001>
module attributes {stable_mosaic.version = 11 : i64} {
  func.func @kernel(%arg0: i32, %arg1: memref<2x16x32xbf16, #tpu.memory_space<vmem>>, %arg2: memref<16x16xbf16, #tpu.memory_space<vmem>>, %arg3: memref<8x128x128xbf16, #tpu.memory_space<vmem>>, %arg4: memref<8x128xf32, #tpu.memory_space<vmem>>, %arg5: memref<3x16x128xf32, #tpu.memory_space<vmem>>) attributes {dimension_semantics = [#tpu.dimension_semantics<parallel>], iteration_bounds = array<i64: 1>, scalar_prefetch = 0 : i64, scratch_operands = 0 : i64, tpu.core_type = #tpu.core_type<tc>, window_params = [{transform_indices = @transform_0, window_bounds = array<i64: 2, 16, 32>}, {transform_indices = @transform_1, window_bounds = array<i64: 16, 16>}, {pipeline_mode = #tpu.pipeline_mode<synchronous>, transform_indices = @transform_2, window_bounds = array<i64: 8, 128, 128>}, {pipeline_mode = #tpu.pipeline_mode<synchronous>, transform_indices = @transform_3, window_bounds = array<i64: 8, 128>}, {transform_indices = @transform_4, window_bounds = array<i64: 3, 16, 128>}]} {
    %c0 = arith.constant 0 : index
    %c0_0 = arith.constant 0 : index
    %c0_1 = arith.constant 0 : index
    %0 = vector.load %arg1[%c0, %c0_0, %c0_1] : memref<2x16x32xbf16, #tpu.memory_space<vmem>>, vector<2x16x32xbf16>
    %1 = vector.shape_cast %0 : vector<2x16x32xbf16> to vector<32x32xbf16>
    %c0_2 = arith.constant 0 : index
    %c0_3 = arith.constant 0 : index
    %2 = vector.load %arg2[%c0_2, %c0_3] : memref<16x16xbf16, #tpu.memory_space<vmem>>, vector<16x16xbf16>
    %c0_4 = arith.constant 0 : index
    %c0_5 = arith.constant 0 : index
    %c0_6 = arith.constant 0 : index
    %3 = vector.load %arg3[%c0_4, %c0_5, %c0_6] : memref<8x128x128xbf16, #tpu.memory_space<vmem>>, vector<1x32x128xbf16>
    %4 = vector.shape_cast %3 : vector<1x32x128xbf16> to vector<32x128xbf16>
    %cst = arith.constant dense<0.000000e+00> : vector<32x128xf32>
    %5 = tpu.matmul %1, %4, %cst {dimension_numbers = #tpu.dot_dimension_numbers<[1], [0], [0], [1], [0, 0, 1, 1], [], []>} : vector<32x32xbf16>, vector<32x128xbf16>, vector<32x128xf32> -> vector<32x128xf32>
    %c0_7 = arith.constant 0 : index
    %c0_8 = arith.constant 0 : index
    %6 = vector.load %arg4[%c0_7, %c0_8] : memref<8x128xf32, #tpu.memory_space<vmem>>, vector<1x128xf32>
    %7 = vector.broadcast %6 : vector<1x128xf32> to vector<32x128xf32>
    %8 = arith.addf %5, %7 : vector<32x128xf32>
    %cst_9 = arith.constant 0.000000e+00 : f32
    %9 = vector.broadcast %cst_9 : f32 to vector<32x128xf32>
    %10 = arith.maximumf %8, %9 : vector<32x128xf32>
    %c1 = arith.constant 1 : index
    %c0_10 = arith.constant 0 : index
    %c0_11 = arith.constant 0 : index
    %11 = vector.load %arg3[%c1, %c0_10, %c0_11] : memref<8x128x128xbf16, #tpu.memory_space<vmem>>, vector<1x128x128xbf16>
    %12 = vector.shape_cast %11 : vector<1x128x128xbf16> to vector<128x128xbf16>
    %13 = arith.truncf %10 : vector<32x128xf32> to vector<32x128xbf16>
    %cst_12 = arith.constant dense<0.000000e+00> : vector<32x128xf32>
    %14 = tpu.matmul %13, %12, %cst_12 {dimension_numbers = #tpu.dot_dimension_numbers<[1], [0], [0], [1], [0, 0, 1, 1], [], []>} : vector<32x128xbf16>, vector<128x128xbf16>, vector<32x128xf32> -> vector<32x128xf32>
    %c1_13 = arith.constant 1 : index
    %c0_14 = arith.constant 0 : index
    %15 = vector.load %arg4[%c1_13, %c0_14] : memref<8x128xf32, #tpu.memory_space<vmem>>, vector<1x128xf32>
    %16 = vector.broadcast %15 : vector<1x128xf32> to vector<32x128xf32>
    %17 = arith.addf %14, %16 : vector<32x128xf32>
    %cst_15 = arith.constant 0.000000e+00 : f32
    %18 = vector.broadcast %cst_15 : f32 to vector<32x128xf32>
    %19 = arith.maximumf %17, %18 : vector<32x128xf32>
    %20 = vector.extract_strided_slice %19 {offsets = [0, 0], sizes = [16, 128], strides = [1, 1]} : vector<32x128xf32> to vector<16x128xf32>
    %21 = vector.extract_strided_slice %19 {offsets = [16, 0], sizes = [16, 128], strides = [1, 1]} : vector<32x128xf32> to vector<16x128xf32>
    %c2 = arith.constant 2 : index
    %c0_16 = arith.constant 0 : index
    %c0_17 = arith.constant 0 : index
    %22 = vector.load %arg3[%c2, %c0_16, %c0_17] : memref<8x128x128xbf16, #tpu.memory_space<vmem>>, vector<1x128x128xbf16>
    %23 = vector.shape_cast %22 : vector<1x128x128xbf16> to vector<128x128xbf16>
    %24 = arith.truncf %20 : vector<16x128xf32> to vector<16x128xbf16>
    %cst_18 = arith.constant dense<0.000000e+00> : vector<16x128xf32>
    %25 = tpu.matmul %24, %23, %cst_18 {dimension_numbers = #tpu.dot_dimension_numbers<[1], [0], [0], [1], [0, 0, 1, 1], [], []>} : vector<16x128xbf16>, vector<128x128xbf16>, vector<16x128xf32> -> vector<16x128xf32>
    %c3 = arith.constant 3 : index
    %c0_19 = arith.constant 0 : index
    %c0_20 = arith.constant 0 : index
    %26 = vector.load %arg3[%c3, %c0_19, %c0_20] : memref<8x128x128xbf16, #tpu.memory_space<vmem>>, vector<1x128x128xbf16>
    %27 = vector.shape_cast %26 : vector<1x128x128xbf16> to vector<128x128xbf16>
    %28 = arith.truncf %21 : vector<16x128xf32> to vector<16x128xbf16>
    %cst_21 = arith.constant dense<0.000000e+00> : vector<16x128xf32>
    %29 = tpu.matmul %28, %27, %cst_21 {dimension_numbers = #tpu.dot_dimension_numbers<[1], [0], [0], [1], [0, 0, 1, 1], [], []>} : vector<16x128xbf16>, vector<128x128xbf16>, vector<16x128xf32> -> vector<16x128xf32>
    %30 = arith.addf %25, %29 : vector<16x128xf32>
    %c2_22 = arith.constant 2 : index
    %c0_23 = arith.constant 0 : index
    %31 = vector.load %arg4[%c2_22, %c0_23] : memref<8x128xf32, #tpu.memory_space<vmem>>, vector<1x128xf32>
    %32 = vector.broadcast %31 : vector<1x128xf32> to vector<16x128xf32>
    %33 = arith.addf %30, %32 : vector<16x128xf32>
    %cst_24 = arith.constant 0.000000e+00 : f32
    %34 = vector.broadcast %cst_24 : f32 to vector<16x128xf32>
    %35 = arith.maximumf %33, %34 : vector<16x128xf32>
    %c4 = arith.constant 4 : index
    %c0_25 = arith.constant 0 : index
    %c0_26 = arith.constant 0 : index
    %36 = vector.load %arg3[%c4, %c0_25, %c0_26] : memref<8x128x128xbf16, #tpu.memory_space<vmem>>, vector<1x128x128xbf16>
    %37 = vector.shape_cast %36 : vector<1x128x128xbf16> to vector<128x128xbf16>
    %38 = arith.truncf %35 : vector<16x128xf32> to vector<16x128xbf16>
    %cst_27 = arith.constant dense<0.000000e+00> : vector<16x128xf32>
    %39 = tpu.matmul %38, %37, %cst_27 {dimension_numbers = #tpu.dot_dimension_numbers<[1], [0], [0], [1], [0, 0, 1, 1], [], []>} : vector<16x128xbf16>, vector<128x128xbf16>, vector<16x128xf32> -> vector<16x128xf32>
    %c3_28 = arith.constant 3 : index
    %c0_29 = arith.constant 0 : index
    %40 = vector.load %arg4[%c3_28, %c0_29] : memref<8x128xf32, #tpu.memory_space<vmem>>, vector<1x128xf32>
    %41 = vector.broadcast %40 : vector<1x128xf32> to vector<16x128xf32>
    %42 = arith.addf %39, %41 : vector<16x128xf32>
    %c5 = arith.constant 5 : index
    %c0_30 = arith.constant 0 : index
    %c0_31 = arith.constant 0 : index
    %43 = vector.load %arg3[%c5, %c0_30, %c0_31] : memref<8x128x128xbf16, #tpu.memory_space<vmem>>, vector<1x128x128xbf16>
    %44 = vector.shape_cast %43 : vector<1x128x128xbf16> to vector<128x128xbf16>
    %45 = arith.truncf %20 : vector<16x128xf32> to vector<16x128xbf16>
    %cst_32 = arith.constant dense<0.000000e+00> : vector<16x128xf32>
    %46 = tpu.matmul %45, %44, %cst_32 {dimension_numbers = #tpu.dot_dimension_numbers<[1], [0], [0], [1], [0, 0, 1, 1], [], []>} : vector<16x128xbf16>, vector<128x128xbf16>, vector<16x128xf32> -> vector<16x128xf32>
    %c6 = arith.constant 6 : index
    %c0_33 = arith.constant 0 : index
    %c0_34 = arith.constant 0 : index
    %47 = vector.load %arg3[%c6, %c0_33, %c0_34] : memref<8x128x128xbf16, #tpu.memory_space<vmem>>, vector<1x16x128xbf16>
    %48 = vector.shape_cast %47 : vector<1x16x128xbf16> to vector<16x128xbf16>
    %cst_35 = arith.constant dense<0.000000e+00> : vector<16x128xf32>
    %49 = tpu.matmul %2, %48, %cst_35 {dimension_numbers = #tpu.dot_dimension_numbers<[1], [0], [0], [1], [0, 0, 1, 1], [], []>} : vector<16x16xbf16>, vector<16x128xbf16>, vector<16x128xf32> -> vector<16x128xf32>
    %50 = arith.addf %46, %49 : vector<16x128xf32>
    %c4_36 = arith.constant 4 : index
    %c0_37 = arith.constant 0 : index
    %51 = vector.load %arg4[%c4_36, %c0_37] : memref<8x128xf32, #tpu.memory_space<vmem>>, vector<1x128xf32>
    %52 = vector.broadcast %51 : vector<1x128xf32> to vector<16x128xf32>
    %53 = arith.addf %50, %52 : vector<16x128xf32>
    %cst_38 = arith.constant 0.000000e+00 : f32
    %54 = vector.broadcast %cst_38 : f32 to vector<16x128xf32>
    %55 = arith.maximumf %53, %54 : vector<16x128xf32>
    %c7 = arith.constant 7 : index
    %c0_39 = arith.constant 0 : index
    %c0_40 = arith.constant 0 : index
    %56 = vector.load %arg3[%c7, %c0_39, %c0_40] : memref<8x128x128xbf16, #tpu.memory_space<vmem>>, vector<1x128x128xbf16>
    %57 = vector.shape_cast %56 : vector<1x128x128xbf16> to vector<128x128xbf16>
    %58 = arith.truncf %55 : vector<16x128xf32> to vector<16x128xbf16>
    %cst_41 = arith.constant dense<0.000000e+00> : vector<16x128xf32>
    %59 = tpu.matmul %58, %57, %cst_41 {dimension_numbers = #tpu.dot_dimension_numbers<[1], [0], [0], [1], [0, 0, 1, 1], [], []>} : vector<16x128xbf16>, vector<128x128xbf16>, vector<16x128xf32> -> vector<16x128xf32>
    %c5_42 = arith.constant 5 : index
    %c0_43 = arith.constant 0 : index
    %60 = vector.load %arg4[%c5_42, %c0_43] : memref<8x128xf32, #tpu.memory_space<vmem>>, vector<1x128xf32>
    %61 = vector.broadcast %60 : vector<1x128xf32> to vector<16x128xf32>
    %62 = arith.addf %59, %61 : vector<16x128xf32>
    %c0_44 = arith.constant 0 : index
    %c0_45 = arith.constant 0 : index
    %c0_46 = arith.constant 0 : index
    %63 = vector.load %arg5[%c0_44, %c0_45, %c0_46] : memref<3x16x128xf32, #tpu.memory_space<vmem>>, vector<1x16x128xf32>
    %64 = vector.shape_cast %63 : vector<1x16x128xf32> to vector<16x128xf32>
    %65 = vector.shape_cast %42 : vector<16x128xf32> to vector<1x16x128xf32>
    tpu.vector_store %arg5[%c0_44, %c0_45, %c0_46], %65 {strides = array<i32>} : memref<3x16x128xf32, #tpu.memory_space<vmem>>, vector<1x16x128xf32>,
    %c1_47 = arith.constant 1 : index
    %c0_48 = arith.constant 0 : index
    %c0_49 = arith.constant 0 : index
    %66 = vector.load %arg5[%c1_47, %c0_48, %c0_49] : memref<3x16x128xf32, #tpu.memory_space<vmem>>, vector<1x16x128xf32>
    %67 = vector.shape_cast %66 : vector<1x16x128xf32> to vector<16x128xf32>
    %68 = vector.shape_cast %62 : vector<16x128xf32> to vector<1x16x128xf32>
    tpu.vector_store %arg5[%c1_47, %c0_48, %c0_49], %68 {strides = array<i32>} : memref<3x16x128xf32, #tpu.memory_space<vmem>>, vector<1x16x128xf32>,
    %c2_50 = arith.constant 2 : index
    %c0_51 = arith.constant 0 : index
    %c0_52 = arith.constant 0 : index
    %69 = vector.load %arg5[%c2_50, %c0_51, %c0_52] : memref<3x16x128xf32, #tpu.memory_space<vmem>>, vector<1x16x128xf32>
    %70 = vector.shape_cast %69 : vector<1x16x128xf32> to vector<16x128xf32>
    %71 = vector.shape_cast %21 : vector<16x128xf32> to vector<1x16x128xf32>
    tpu.vector_store %arg5[%c2_50, %c0_51, %c0_52], %71 {strides = array<i32>} : memref<3x16x128xf32, #tpu.memory_space<vmem>>, vector<1x16x128xf32>,
    return
  }
  func.func @transform_0(%arg0: i32) -> (i32, i32, i32) {
    %c0_i32 = arith.constant 0 : i32
    %c0_i32_0 = arith.constant 0 : i32
    %c0_i32_1 = arith.constant 0 : i32
    return %c0_i32, %arg0, %c0_i32_0 : i32, i32, i32
  }
  func.func @transform_1(%arg0: i32) -> (i32, i32) {
    %c0_i32 = arith.constant 0 : i32
    %c0_i32_0 = arith.constant 0 : i32
    return %arg0, %c0_i32 : i32, i32
  }
  func.func @transform_2(%arg0: i32) -> (i32, i32, i32) {
    %c0_i32 = arith.constant 0 : i32
    %c0_i32_0 = arith.constant 0 : i32
    %c0_i32_1 = arith.constant 0 : i32
    %c0_i32_2 = arith.constant 0 : i32
    return %c0_i32, %c0_i32_0, %c0_i32_1 : i32, i32, i32
  }
  func.func @transform_3(%arg0: i32) -> (i32, i32) {
    %c0_i32 = arith.constant 0 : i32
    %c0_i32_0 = arith.constant 0 : i32
    %c0_i32_1 = arith.constant 0 : i32
    return %c0_i32, %c0_i32_0 : i32, i32
  }
  func.func @transform_4(%arg0: i32) -> (i32, i32, i32) {
    %c0_i32 = arith.constant 0 : i32
    %c0_i32_0 = arith.constant 0 : i32
    %c0_i32_1 = arith.constant 0 : i32
    return %c0_i32, %arg0, %c0_i32_0 : i32, i32, i32
  }
}

module attributes {stable_mosaic.version = 11 : i64} {
  func.func @kernel(%arg0: i32, %arg1: memref<2x16x32xbf16, #tpu.memory_space<vmem>>, %arg2: memref<16x16xbf16, #tpu.memory_space<vmem>>, %arg3: memref<8x128x128xbf16, #tpu.memory_space<vmem>>, %arg4: memref<8x128xf32, #tpu.memory_space<vmem>>, %arg5: memref<3x16x128xf32, #tpu.memory_space<vmem>>) attributes {dimension_semantics = [#tpu.dimension_semantics<parallel>], iteration_bounds = array<i64: 1>, scalar_prefetch = 0 : i64, scratch_operands = 0 : i64, tpu.core_type = #tpu.core_type<tc>, window_params = [{transform_indices = @transform_0, window_bounds = array<i64: 2, 16, 32>}, {transform_indices = @transform_1, window_bounds = array<i64: 16, 16>}, {pipeline_mode = #tpu.pipeline_mode<synchronous>, transform_indices = @transform_2, window_bounds = array<i64: 8, 128, 128>}, {pipeline_mode = #tpu.pipeline_mode<synchronous>, transform_indices = @transform_3, window_bounds = array<i64: 8, 128>}, {transform_indices = @transform_4, window_bounds = array<i64: 3, 16, 128>}]} {
    %c0 = arith.constant 0 : index
    %c0_0 = arith.constant 0 : index
    %c0_1 = arith.constant 0 : index
    %0 = vector.load %arg1[%c0, %c0_0, %c0_1] : memref<2x16x32xbf16, #tpu.memory_space<vmem>>, vector<2x16x32xbf16>
    %1 = vector.shape_cast %0 : vector<2x16x32xbf16> to vector<32x32xbf16>
    %c0_2 = arith.constant 0 : index
    %c0_3 = arith.constant 0 : index
    %2 = vector.load %arg2[%c0_2, %c0_3] : memref<16x16xbf16, #tpu.memory_space<vmem>>, vector<16x16xbf16>
    %c0_4 = arith.constant 0 : index
    %c0_5 = arith.constant 0 : index
    %c0_6 = arith.constant 0 : index
    %3 = vector.load %arg3[%c0_4, %c0_5, %c0_6] : memref<8x128x128xbf16, #tpu.memory_space<vmem>>, vector<1x32x128xbf16>
    %4 = vector.shape_cast %3 : vector<1x32x128xbf16> to vector<32x128xbf16>
    %cst = arith.constant dense<0.000000e+00> : vector<32x128xf32>
    %5 = tpu.matmul %1, %4, %cst {dimension_numbers = #tpu.dot_dimension_numbers<[1], [0], [0], [1], [0, 0, 1, 1], [], []>} : vector<32x32xbf16>, vector<32x128xbf16>, vector<32x128xf32> -> vector<32x128xf32>
    %c0_7 = arith.constant 0 : index
    %c0_8 = arith.constant 0 : index
    %6 = vector.load %arg4[%c0_7, %c0_8] : memref<8x128xf32, #tpu.memory_space<vmem>>, vector<1x128xf32>
    %7 = vector.broadcast %6 : vector<1x128xf32> to vector<32x128xf32>
    %8 = arith.addf %5, %7 : vector<32x128xf32>
    %cst_9 = arith.constant 0.000000e+00 : f32
    %9 = vector.broadcast %cst_9 : f32 to vector<32x128xf32>
    %10 = arith.maximumf %8, %9 : vector<32x128xf32>
    %c1 = arith.constant 1 : index
    %c0_10 = arith.constant 0 : index
    %c0_11 = arith.constant 0 : index
    %11 = vector.load %arg3[%c1, %c0_10, %c0_11] : memref<8x128x128xbf16, #tpu.memory_space<vmem>>, vector<1x128x128xbf16>
    %12 = vector.shape_cast %11 : vector<1x128x128xbf16> to vector<128x128xbf16>
    %13 = arith.truncf %10 : vector<32x128xf32> to vector<32x128xbf16>
    %cst_12 = arith.constant dense<0.000000e+00> : vector<32x128xf32>
    %14 = tpu.matmul %13, %12, %cst_12 {dimension_numbers = #tpu.dot_dimension_numbers<[1], [0], [0], [1], [0, 0, 1, 1], [], []>} : vector<32x128xbf16>, vector<128x128xbf16>, vector<32x128xf32> -> vector<32x128xf32>
    %c1_13 = arith.constant 1 : index
    %c0_14 = arith.constant 0 : index
    %15 = vector.load %arg4[%c1_13, %c0_14] : memref<8x128xf32, #tpu.memory_space<vmem>>, vector<1x128xf32>
    %16 = vector.broadcast %15 : vector<1x128xf32> to vector<32x128xf32>
    %17 = arith.addf %14, %16 : vector<32x128xf32>
    %cst_15 = arith.constant 0.000000e+00 : f32
    %18 = vector.broadcast %cst_15 : f32 to vector<32x128xf32>
    %19 = arith.maximumf %17, %18 : vector<32x128xf32>
    %20 = vector.extract_strided_slice %19 {offsets = [0, 0], sizes = [16, 128], strides = [1, 1]} : vector<32x128xf32> to vector<16x128xf32>
    %21 = vector.extract_strided_slice %19 {offsets = [16, 0], sizes = [16, 128], strides = [1, 1]} : vector<32x128xf32> to vector<16x128xf32>
    %c2 = arith.constant 2 : index
    %c0_16 = arith.constant 0 : index
    %c0_17 = arith.constant 0 : index
    %22 = vector.load %arg3[%c2, %c0_16, %c0_17] : memref<8x128x128xbf16, #tpu.memory_space<vmem>>, vector<1x128x128xbf16>
    %23 = vector.shape_cast %22 : vector<1x128x128xbf16> to vector<128x128xbf16>
    %24 = arith.truncf %20 : vector<16x128xf32> to vector<16x128xbf16>
    %cst_18 = arith.constant dense<0.000000e+00> : vector<16x128xf32>
    %25 = tpu.matmul %24, %23, %cst_18 {dimension_numbers = #tpu.dot_dimension_numbers<[1], [0], [0], [1], [0, 0, 1, 1], [], []>} : vector<16x128xbf16>, vector<128x128xbf16>, vector<16x128xf32> -> vector<16x128xf32>
    %c3 = arith.constant 3 : index
    %c0_19 = arith.constant 0 : index
    %c0_20 = arith.constant 0 : index
    %26 = vector.load %arg3[%c3, %c0_19, %c0_20] : memref<8x128x128xbf16, #tpu.memory_space<vmem>>, vector<1x128x128xbf16>
    %27 = vector.shape_cast %26 : vector<1x128x128xbf16> to vector<128x128xbf16>
    %28 = arith.truncf %21 : vector<16x128xf32> to vector<16x128xbf16>
    %cst_21 = arith.constant dense<0.000000e+00> : vector<16x128xf32>
    %29 = tpu.matmul %28, %27, %cst_21 {dimension_numbers = #tpu.dot_dimension_numbers<[1], [0], [0], [1], [0, 0, 1, 1], [], []>} : vector<16x128xbf16>, vector<128x128xbf16>, vector<16x128xf32> -> vector<16x128xf32>
    %30 = arith.addf %25, %29 : vector<16x128xf32>
    %c2_22 = arith.constant 2 : index
    %c0_23 = arith.constant 0 : index
    %31 = vector.load %arg4[%c2_22, %c0_23] : memref<8x128xf32, #tpu.memory_space<vmem>>, vector<1x128xf32>
    %32 = vector.broadcast %31 : vector<1x128xf32> to vector<16x128xf32>
    %33 = arith.addf %30, %32 : vector<16x128xf32>
    %cst_24 = arith.constant 0.000000e+00 : f32
    %34 = vector.broadcast %cst_24 : f32 to vector<16x128xf32>
    %35 = arith.maximumf %33, %34 : vector<16x128xf32>
    %c4 = arith.constant 4 : index
    %c0_25 = arith.constant 0 : index
    %c0_26 = arith.constant 0 : index
    %36 = vector.load %arg3[%c4, %c0_25, %c0_26] : memref<8x128x128xbf16, #tpu.memory_space<vmem>>, vector<1x128x128xbf16>
    %37 = vector.shape_cast %36 : vector<1x128x128xbf16> to vector<128x128xbf16>
    %38 = arith.truncf %35 : vector<16x128xf32> to vector<16x128xbf16>
    %cst_27 = arith.constant dense<0.000000e+00> : vector<16x128xf32>
    %39 = tpu.matmul %38, %37, %cst_27 {dimension_numbers = #tpu.dot_dimension_numbers<[1], [0], [0], [1], [0, 0, 1, 1], [], []>} : vector<16x128xbf16>, vector<128x128xbf16>, vector<16x128xf32> -> vector<16x128xf32>
    %c3_28 = arith.constant 3 : index
    %c0_29 = arith.constant 0 : index
    %40 = vector.load %arg4[%c3_28, %c0_29] : memref<8x128xf32, #tpu.memory_space<vmem>>, vector<1x128xf32>
    %41 = vector.broadcast %40 : vector<1x128xf32> to vector<16x128xf32>
    %42 = arith.addf %39, %41 : vector<16x128xf32>
    %c5 = arith.constant 5 : index
    %c0_30 = arith.constant 0 : index
    %c0_31 = arith.constant 0 : index
    %43 = vector.load %arg3[%c5, %c0_30, %c0_31] : memref<8x128x128xbf16, #tpu.memory_space<vmem>>, vector<1x128x128xbf16>
    %44 = vector.shape_cast %43 : vector<1x128x128xbf16> to vector<128x128xbf16>
    %45 = arith.truncf %20 : vector<16x128xf32> to vector<16x128xbf16>
    %cst_32 = arith.constant dense<0.000000e+00> : vector<16x128xf32>
    %46 = tpu.matmul %45, %44, %cst_32 {dimension_numbers = #tpu.dot_dimension_numbers<[1], [0], [0], [1], [0, 0, 1, 1], [], []>} : vector<16x128xbf16>, vector<128x128xbf16>, vector<16x128xf32> -> vector<16x128xf32>
    %c6 = arith.constant 6 : index
    %c0_33 = arith.constant 0 : index
    %c0_34 = arith.constant 0 : index
    %47 = vector.load %arg3[%c6, %c0_33, %c0_34] : memref<8x128x128xbf16, #tpu.memory_space<vmem>>, vector<1x16x128xbf16>
    %48 = vector.shape_cast %47 : vector<1x16x128xbf16> to vector<16x128xbf16>
    %cst_35 = arith.constant dense<0.000000e+00> : vector<16x128xf32>
    %49 = tpu.matmul %2, %48, %cst_35 {dimension_numbers = #tpu.dot_dimension_numbers<[1], [0], [0], [1], [0, 0, 1, 1], [], []>} : vector<16x16xbf16>, vector<16x128xbf16>, vector<16x128xf32> -> vector<16x128xf32>
    %50 = arith.addf %46, %49 : vector<16x128xf32>
    %c4_36 = arith.constant 4 : index
    %c0_37 = arith.constant 0 : index
    %51 = vector.load %arg4[%c4_36, %c0_37] : memref<8x128xf32, #tpu.memory_space<vmem>>, vector<1x128xf32>
    %52 = vector.broadcast %51 : vector<1x128xf32> to vector<16x128xf32>
    %53 = arith.addf %50, %52 : vector<16x128xf32>
    %cst_38 = arith.constant 0.000000e+00 : f32
    %54 = vector.broadcast %cst_38 : f32 to vector<16x128xf32>
    %55 = arith.maximumf %53, %54 : vector<16x128xf32>
    %c7 = arith.constant 7 : index
    %c0_39 = arith.constant 0 : index
    %c0_40 = arith.constant 0 : index
    %56 = vector.load %arg3[%c7, %c0_39, %c0_40] : memref<8x128x128xbf16, #tpu.memory_space<vmem>>, vector<1x128x128xbf16>
    %57 = vector.shape_cast %56 : vector<1x128x128xbf16> to vector<128x128xbf16>
    %58 = arith.truncf %55 : vector<16x128xf32> to vector<16x128xbf16>
    %cst_41 = arith.constant dense<0.000000e+00> : vector<16x128xf32>
    %59 = tpu.matmul %58, %57, %cst_41 {dimension_numbers = #tpu.dot_dimension_numbers<[1], [0], [0], [1], [0, 0, 1, 1], [], []>} : vector<16x128xbf16>, vector<128x128xbf16>, vector<16x128xf32> -> vector<16x128xf32>
    %c5_42 = arith.constant 5 : index
    %c0_43 = arith.constant 0 : index
    %60 = vector.load %arg4[%c5_42, %c0_43] : memref<8x128xf32, #tpu.memory_space<vmem>>, vector<1x128xf32>
    %61 = vector.broadcast %60 : vector<1x128xf32> to vector<16x128xf32>
    %62 = arith.addf %59, %61 : vector<16x128xf32>
    %c0_44 = arith.constant 0 : index
    %c0_45 = arith.constant 0 : index
    %c0_46 = arith.constant 0 : index
    %63 = vector.load %arg5[%c0_44, %c0_45, %c0_46] : memref<3x16x128xf32, #tpu.memory_space<vmem>>, vector<1x16x128xf32>
    %64 = vector.shape_cast %63 : vector<1x16x128xf32> to vector<16x128xf32>
    %65 = vector.shape_cast %42 : vector<16x128xf32> to vector<1x16x128xf32>
    tpu.vector_store %arg5[%c0_44, %c0_45, %c0_46], %65 {strides = array<i32>} : memref<3x16x128xf32, #tpu.memory_space<vmem>>, vector<1x16x128xf32>,
    %c1_47 = arith.constant 1 : index
    %c0_48 = arith.constant 0 : index
    %c0_49 = arith.constant 0 : index
    %66 = vector.load %arg5[%c1_47, %c0_48, %c0_49] : memref<3x16x128xf32, #tpu.memory_space<vmem>>, vector<1x16x128xf32>
    %67 = vector.shape_cast %66 : vector<1x16x128xf32> to vector<16x128xf32>
    %68 = vector.shape_cast %62 : vector<16x128xf32> to vector<1x16x128xf32>
    tpu.vector_store %arg5[%c1_47, %c0_48, %c0_49], %68 {strides = array<i32>} : memref<3x16x128xf32, #tpu.memory_space<vmem>>, vector<1x16x128xf32>,
    %c2_50 = arith.constant 2 : index
    %c0_51 = arith.constant 0 : index
    %c0_52 = arith.constant 0 : index
    %69 = vector.load %arg5[%c2_50, %c0_51, %c0_52] : memref<3x16x128xf32, #tpu.memory_space<vmem>>, vector<1x16x128xf32>
    %70 = vector.shape_cast %69 : vector<1x16x128xf32> to vector<16x128xf32>
    %71 = vector.shape_cast %21 : vector<16x128xf32> to vector<1x16x128xf32>
    tpu.vector_store %arg5[%c2_50, %c0_51, %c0_52], %71 {strides = array<i32>} : memref<3x16x128xf32, #tpu.memory_space<vmem>>, vector<1x16x128xf32>,
    return
  }
  func.func @transform_0(%arg0: i32) -> (i32, i32, i32) {
    %c0_i32 = arith.constant 0 : i32
    %c0_i32_0 = arith.constant 0 : i32
    %c0_i32_1 = arith.constant 0 : i32
    return %c0_i32, %arg0, %c0_i32_0 : i32, i32, i32
  }
  func.func @transform_1(%arg0: i32) -> (i32, i32) {
    %c0_i32 = arith.constant 0 : i32
    %c0_i32_0 = arith.constant 0 : i32
    return %arg0, %c0_i32 : i32, i32
  }
  func.func @transform_2(%arg0: i32) -> (i32, i32, i32) {
    %c0_i32 = arith.constant 0 : i32
    %c0_i32_0 = arith.constant 0 : i32
    %c0_i32_1 = arith.constant 0 : i32
    %c0_i32_2 = arith.constant 0 : i32
    return %c0_i32, %c0_i32_0, %c0_i32_1 : i32, i32, i32
  }
  func.func @transform_3(%arg0: i32) -> (i32, i32) {
    %c0_i32 = arith.constant 0 : i32
    %c0_i32_0 = arith.constant 0 : i32
    %c0_i32_1 = arith.constant 0 : i32
    return %c0_i32, %c0_i32_0 : i32, i32
  }
  func.func @transform_4(%arg0: i32) -> (i32, i32, i32) {
    %c0_i32 = arith.constant 0 : i32
    %c0_i32_0 = arith.constant 0 : i32
    %c0_i32_1 = arith.constant 0 : i32
    return %c0_i32, %arg0, %c0_i32_0 : i32, i32, i32
  }
}

</mosaic_0001>

<bundles_post_ra>
// kernel: tpu_custom_call.1
= control target key start
LH: loop header
LB: loop body
LE: loop exit
PB: predicated region body
PF: predicated region fallthrough
CT: control target
= control target key end

     0   :  { %9 = vsyncpa [#allocation3], 0  ;;  %s1481_s0 = inlined_call_operand.hbm [shape: bf16[2,16,32], index: 0, kind: input, shape index: {}]   ;;  %s1482_s1 = inlined_call_operand.hbm [shape: bf16[16,16], index: 1, kind: input, shape index: {}]   ;;  %s1483_s2 = inlined_call_operand.hbm [shape: bf16[8,128,128], index: 2, kind: input, shape index: {}]   ;;  %s1484_s3 = inlined_call_operand.hbm [shape: f32[8,128], index: 3, kind: input, shape index: {}]   ;;  %s1485_s4 = inlined_call_operand.hbm [shape: f32[3,16,128], index: 4, kind: output, shape index: {}]  }
   0x1   :  { %10 = vsyncpa [#allocation6], 0 }
   0x2   :  { %11 = vsyncpa [#allocation9], 0 }
   0x3   :  { %12 = vsyncpa [#allocation4], 0  ;;  %s1373_s15 = smov [#allocation5]   ;;  %s1374_s17 = smov [#allocation2]  }
   0x4   :  { %s30_s16 = sshll.u32 %s1373_s15, 4  ;;  %s18_s18 = sshll.u32 %s1374_s17, 4  ;;  %s31_s16 = int_to_ptr.vmem [resolvable:$true] %s30_s16  ;;  %s19_s18 = int_to_ptr.vmem [resolvable:$true] %s18_s18 }
   0x5   :  { %s1273_s19 = scalar_lea.vmem %s31_s16, 128  ;;  %p1278_p1 = scmp.lt.s32.totalorder %s31_s16, %s31_s16 }
   0x6   :  { %p1274_p0 = scmp.ne.s32.totalorder %s31_s16, %s1273_s19  ;;  %p1279_p2 = scmp.lt.s32.totalorder %s1273_s19, %s1273_s19 }
   0x8   :  { %p1280_p3 = por %p1279_p2, %p1278_p1 }
   0xa   :  { %p1281_p4 = pnand %p1280_p3, %p1274_p0 }
   0xc   :  { %1284 = shalt.err (!%p1281_p4)
}
   0xd   :  { %s1375_s20 = smov 64   ;;  %s1376_s21 = smov 4  }
   0xe   :  { %36 = dma.hbm_to_vmem [thread:$0]  %s1482_s1, 128, %s31_s16, [#allocation6], %s1375_s20, %s1375_s20, %s1376_s21  }
   0xf   :  { %s1293_s24 = scalar_lea.vmem %s19_s18, 256  ;;  %p1298_p6 = scmp.lt.s32.totalorder %s19_s18, %s19_s18 }
  0x10   :  { %p1294_p5 = scmp.ne.s32.totalorder %s19_s18, %s1293_s24  ;;  %p1299_p7 = scmp.lt.s32.totalorder %s1293_s24, %s1293_s24 }
  0x12   :  { %p1300_p8 = por %p1299_p7, %p1298_p6 }
  0x14   :  { %p1301_p9 = pnand %p1300_p8, %p1294_p5 }
  0x16   :  { %1304 = shalt.err (!%p1301_p9)
}
  0x17   :  { %24 = dma.hbm_to_vmem [thread:$0]  %s1481_s0, 256, %s19_s18, [#allocation3], %s1375_s20, %s1375_s20, %s1376_s21  }
  0x18   :  { %s1377_s27 = smov [#allocation7]   ;;  %s1378_s29 = smov [#allocation8]  }
  0x19   :  { %s42_s28 = sshll.u32 %s1377_s27, 4  ;;  %s55_s30 = sshll.u32 %s1378_s29, 4  ;;  %s43_s28 = int_to_ptr.vmem [resolvable:$true] %s42_s28  ;;  %s56_s30 = int_to_ptr.vmem [resolvable:$true] %s55_s30 }
  0x1a   :  { %s1313_s5 = scalar_lea.vmem %s43_s28, 8192  ;;  %p1318_p11 = scmp.lt.s32.totalorder %s43_s28, %s43_s28 }
  0x1b   :  { %p1314_p10 = scmp.ne.s32.totalorder %s43_s28, %s1313_s5  ;;  %p1319_p12 = scmp.lt.s32.totalorder %s1313_s5, %s1313_s5 }
  0x1d   :  { %p1320_p13 = por %p1319_p12, %p1318_p11 }
  0x1f   :  { %p1321_p0 = pnand %p1320_p13, %p1314_p10 }
  0x21   :  { %1324 = shalt.err (!%p1321_p0)
}
  0x22   :  { %48 = dma.hbm_to_vmem [thread:$0]  %s1483_s2, 8192, %s43_s28, [#allocation6], %s1375_s20, %s1375_s20, %s1376_s21  }
  0x23   :  { %s1333_s7 = scalar_lea.vmem %s56_s30, 128  ;;  %p1338_p2 = scmp.lt.s32.totalorder %s56_s30, %s56_s30 }
  0x24   :  { %p1334_p1 = scmp.ne.s32.totalorder %s56_s30, %s1333_s7  ;;  %p1339_p3 = scmp.lt.s32.totalorder %s1333_s7, %s1333_s7 }
  0x26   :  { %p1340_p4 = por %p1339_p3, %p1338_p2 }
  0x28   :  { %p1341_p5 = pnand %p1340_p4, %p1334_p1 }
  0x2a   :  { %1344 = shalt.err (!%p1341_p5)
}
  0x2b   :  { %58 = dma.hbm_to_vmem [thread:$0]  %s1484_s3, 128, %s56_s30, [#allocation9]  }
  0x2c   :  { %1365 = dma.done.wait [#allocation3], 256  }
  0x2d   :  { %1366 = vsyncadd [#allocation3], 4294967040 }
  0x2e   :  { %1367 = dma.done.wait [#allocation6], 8320  }
  0x2f   :  { %1368 = vsyncadd [#allocation6], 4294958976 }
  0x30   :  { %1369 = dma.done.wait [#allocation9], 128  }
  0x31   :  { %1370 = vsyncadd [#allocation9], 4294967168  ;;  %v1211_v0 = vld [vmem:[#allocation7 + $0x8] sm:$0xff]   ;;  %v1212_v1 = vld [vmem:[#allocation7] sm:$0xff]   ;;  %vm109_vm0 = vcmask 261120   ;;  %v1379_v13 = vmov 0.0  }
  0x32   :  { %1066 = vmatprep.subr.bf16.mxu0 %v1211_v0  ;;  %v1213_v2 = vld [vmem:[#allocation2] sm:$0xff]   ;;  %v1215_v3 = vld [vmem:[#allocation7 + $0x78] sm:$0xff]   ;;  %v1216_v4 = vld [vmem:[#allocation7 + $0x70] sm:$0xff]   ;;  %vm1380_vm1 = vmmov 0   ;;  %vm660_vm2 = vcmask 130048   ;;  %s1381_s2 = smov [#allocation10]  }
  0x33   :  { %1067 = vmatpush3.bf16.msra.mxu0 %v1211_v0  ;;  %1070 = vmatprep.mubr.msk.bf16.mxu0 %vm109_vm0, %v1213_v2  ;;  %v1214_v5 = vld [vmem:[#allocation2 + $0x8] sm:$0xff]   ;;  %v1217_v6 = vld [vmem:[#allocation7 + $0x68] sm:$0xff]   ;;  %v1218_v7 = vld [vmem:[#allocation7 + $0x60] sm:$0xff]   ;;  %s928_s3 = sshll.u32 %s1381_s2, 4  ;;  %s929_s3 = int_to_ptr.vmem [resolvable:$true] %s928_s3 }
  0x34   :  { %1068 = vmatprep.subr.bf16.mxu0 %v1212_v1  ;;  %1074 = vmatprep.subr.bf16.mxu1 %v1215_v3  ;;  %v1219_v8 = vld [vmem:[#allocation7 + $0x58] sm:$0xff]   ;;  %v1220_v9 = vld [vmem:[#allocation7 + $0x50] sm:$0xff]   ;;  %v1221_v10 = vld [vmem:[#allocation7 + $0x48] sm:$0xff]   ;;  %s1345_s9 = scalar_lea.vmem %s929_s3, 768  ;;  %p1350_p7 = scmp.lt.s32.totalorder %s929_s3, %s929_s3 }
  0x35   :  { %1075 = vmatpush3.bf16.msra.mxu1 %v1215_v3  ;;  %v1222_v11 = vld [vmem:[#allocation7 + $0x40] sm:$0xff]   ;;  %v1223_v12 = vld [vmem:[#allocation7 + $0xf8] sm:$0xff]   ;;  %v1225_v14 = vld [vmem:[#allocation7 + $0xf0] sm:$0xff]   ;;  %p1346_p6 = scmp.ne.s32.totalorder %s929_s3, %s1345_s9  ;;  %p1351_p8 = scmp.lt.s32.totalorder %s1345_s9, %s1345_s9 }
  0x36   :  { %1076 = vmatprep.subr.bf16.mxu1 %v1216_v4  ;;  %v1227_v15 = vld [vmem:[#allocation7 + $0xe8] sm:$0xff]   ;;  %v1229_v16 = vld [vmem:[#allocation7 + $0xe0] sm:$0xff]   ;;  %v1231_v17 = vld [vmem:[#allocation7 + $0xd8] sm:$0xff]  }
  0x37   :  { %1069 = vmatpush3.bf16.msra.mxu0 %v1212_v1  ;;  %v942_v20 = vld [vmem:[#allocation8] ss:$0 sm:$0xff]  ;;  %v1224_v32 = vld [vmem:[#allocation7 + $0xb8] sm:$0xff]   ;;  %v1226_v34 = vld [vmem:[#allocation7 + $0xb0] sm:$0xff]   ;;  %p1352_p9 = por %p1351_p8, %p1350_p7 }
  0x38   :  { %1094 = vmatprep.subr.bf16.mxu0 %v1379_v13  ;;  %v1228_v35 = vld [vmem:[#allocation7 + $0xa8] sm:$0xff]   ;;  %v1230_v36 = vld [vmem:[#allocation7 + $0xa0] sm:$0xff]   ;;  %v1232_v37 = vld [vmem:[#allocation7 + $0x98] sm:$0xff]  }
  0x39   :  { %1077 = vmatpush3.bf16.msra.mxu1 %v1216_v4  ;;  %v1233_v38 = vld [vmem:[#allocation7 + $0xd0] sm:$0xff]   ;;  %v1235_v40 = vld [vmem:[#allocation7 + $0xc8] sm:$0xff]   ;;  %v1237_v42 = vld [vmem:[#allocation7 + $0xc0] sm:$0xff]   ;;  %p1353_p10 = pnand %p1352_p9, %p1346_p6 }
  0x3a   :  { %1071 = vmatmul.mubr.msk.bf16.vlgmr.msra.gmra.mxu0 %vm109_vm0, %v1214_v5  ;;  %1078 = vmatprep.subr.bf16.mxu1 %v1217_v6  ;;  %v1234_v39 = vld [vmem:[#allocation7 + $0x90] sm:$0xff]   ;;  %v1236_v41 = vld [vmem:[#allocation7 + $0x88] sm:$0xff]   ;;  %v1238_v43 = vld [vmem:[#allocation7 + $0x80] sm:$0xff]  }
  0x3b   :  { %1095 = vmatpush3.bf16.msra.mxu0 %v1223_v12  ;;  %1110 = vmatprep.mubr.msk.bf16.mxu0 %vm1380_vm1, %v1379_v13  ;;  %v949_v44 = vld [vmem:[#allocation8 + $0x1] ss:$0 sm:$0xff]  ;;  %v1239_v55 = vld [vmem:[#allocation7 + $0x138] sm:$0xff]   ;;  %v1240_v60 = vld [vmem:[#allocation7 + $0x130] sm:$0xff]  }
  0x3c   :  { %1096 = vmatprep.subr.bf16.mxu0 %v1379_v13  ;;  %v1241_v61 = vld [vmem:[#allocation7 + $0x128] sm:$0xff]   ;;  %v1242_v62 = vld [vmem:[#allocation7 + $0x120] sm:$0xff]   ;;  %v1243_v63 = vld [vmem:[#allocation7 + $0x118] sm:$0xff]  }
  0x3d   :  { %1079 = vmatpush3.bf16.msra.mxu1 %v1217_v6  ;;  %v1244_v0 = vld [vmem:[#allocation7 + $0x110] sm:$0xff]   ;;  %v1245_v1 = vld [vmem:[#allocation7 + $0x108] sm:$0xff]   ;;  %v1246_v2 = vld [vmem:[#allocation7 + $0x100] sm:$0xff]  }
  0x3e   :  { %1080 = vmatprep.subr.bf16.mxu1 %v1218_v7  ;;  %v1253_v3 = vld [vmem:[#allocation7 + $0x180] sm:$0xff]   ;;  %v1255_v4 = vld [vmem:[#allocation5] sm:$0xff]  }
  0x3f   :  { %1097 = vmatpush3.bf16.msra.mxu0 %v1225_v14 }
  0x40   :  { %1098 = vmatprep.subr.bf16.mxu0 %v1379_v13 }
  0x41   :  { %1081 = vmatpush3.bf16.msra.mxu1 %v1218_v7 }
  0x42   :  { %1082 = vmatprep.subr.bf16.mxu1 %v1219_v8 }
  0x43   :  { %1099 = vmatpush3.bf16.msra.mxu0 %v1227_v15 }
  0x44   :  { %1100 = vmatprep.subr.bf16.mxu0 %v1379_v13 }
  0x45   :  { %1083 = vmatpush3.bf16.msra.mxu1 %v1219_v8 }
  0x46   :  { %1084 = vmatprep.subr.bf16.mxu1 %v1220_v9 }
  0x47   :  { %1101 = vmatpush3.bf16.msra.mxu0 %v1229_v16 }
  0x48   :  { %1102 = vmatprep.subr.bf16.mxu0 %v1379_v13 }
  0x49   :  { %1085 = vmatpush3.bf16.msra.mxu1 %v1220_v9  ;;  %v974_v9 = vld [vmem:[#allocation8 + $0x2] ss:$0 sm:$0xff] }
  0x4a   :  { %1086 = vmatprep.subr.bf16.mxu1 %v1221_v10 }
  0x4b   :  { %1103 = vmatpush3.bf16.msra.mxu0 %v1231_v17 }
  0x4c   :  { %1104 = vmatprep.subr.bf16.mxu0 %v1379_v13 }
  0x4d   :  { %1087 = vmatpush3.bf16.msra.mxu1 %v1221_v10 }
  0x4e   :  { %1088 = vmatprep.subr.bf16.mxu1 %v1222_v11 }
  0x4f   :  { %1105 = vmatpush3.bf16.msra.mxu0 %v1233_v38 }
  0x50   :  { %1106 = vmatprep.subr.bf16.mxu0 %v1379_v13 }
  0x51   :  { %1089 = vmatpush3.bf16.msra.mxu1 %v1222_v11 }
  0x52   :  { %1114 = vmatprep.subr.bf16.mxu1 %v1379_v13 }
  0x53   :  { %1107 = vmatpush3.bf16.msra.mxu0 %v1235_v40  ;;  %v1263_v40 = vld [vmem:[#allocation7 + $0x1c8] sm:$0xff]  }
  0x54   :  { %1108 = vmatprep.subr.bf16.mxu0 %v1379_v13 }
  0x57   :  { %1109 = vmatpush3.bf16.msra.mxu0 %v1237_v42  ;;  %v975_v42 = vld [vmem:[#allocation8 + $0x3] ss:$0 sm:$0xff] }
  0x58   :  { %1134 = vmatprep.subr.bf16.mxu0 %v1379_v13 }
  0xfa   :  { %v1072_v18 = vpop.f32.mrf.mxu0 }
  0xfb   :  { %v159_v24 = vadd.f32 %v1072_v18, %v942_v20 }
  0xfc   :  { %v150_v19 = vpop.f32.mrf.mxu0 }
  0xfd   :  { %v151_v22 = vadd.f32 %v942_v20, %v150_v19  ;;  %v167_v30 = vmax.f32 %v159_v24, 0.0  ;;  %v1249_v24 = vld [vmem:[#allocation7 + $0x168] sm:$0xff]  }
  0xfe   :  { %v1073_v21 = vpop.f32.mrf.mxu0 }
  0xff   :  { %v162_v23 = vadd.f32 %v1073_v21, %v942_v20  ;;  %v165_v28 = vmax.f32 %v151_v22, 0.0  ;;  %v1247_v21 = vld [vmem:[#allocation7 + $0x178] sm:$0xff]  }
 0x100   :  { %v153_v25 = vpop.f32.mrf.mxu0 }
 0x101   :  { %v154_v26 = vadd.f32 %v942_v20, %v153_v25  ;;  %v168_v27 = vmax.f32 %v162_v23, 0.0  ;;  %v1248_v23 = vld [vmem:[#allocation7 + $0x170] sm:$0xff]   ;;  %v1250_v25 = vld [vmem:[#allocation7 + $0x160] sm:$0xff]  }
 0x103   :  { %v166_v29 = vmax.f32 %v154_v26, 0.0  ;;  %v187_v33 = vpack.c.bf16 %v168_v27, %v167_v30  ;;  %v1251_v26 = vld [vmem:[#allocation7 + $0x158] sm:$0xff]   ;;  %v1252_v27 = vld [vmem:[#allocation7 + $0x150] sm:$0xff]  }
 0x104   :  { %v1257_v30 = vld [vmem:[#allocation7 + $0x1f8] sm:$0xff]  }
 0x105   :  { %v186_v31 = vpack.c.bf16 %v166_v29, %v165_v28  ;;  %v1254_v28 = vld [vmem:[#allocation7 + $0x148] sm:$0xff]   ;;  %v1256_v29 = vld [vmem:[#allocation7 + $0x140] sm:$0xff]  }
 0x107   :  { %1090 = vmatprep.mubr.bf16.mxu1 %v186_v31  ;;  %v1258_v31 = vld [vmem:[#allocation7 + $0x1f0] sm:$0xff]  }
 0x108   :  { %1091 = vmatmul.mubr.bf16.vlgmr.msra.gmra.mxu1 %v187_v33  ;;  %v1260_v33 = vld [vmem:[#allocation7 + $0x1e0] sm:$0xff]  }
 0x109   :  { %1115 = vmatpush3.bf16.msra.mxu1 %v1224_v32  ;;  %1130 = vmatprep.mubr.msk.bf16.mxu1 %vm1380_vm1, %v1379_v13  ;;  %v1259_v32 = vld [vmem:[#allocation7 + $0x1e8] sm:$0xff]  }
 0x10a   :  { %1116 = vmatprep.subr.bf16.mxu1 %v1379_v13 }
 0x10d   :  { %1117 = vmatpush3.bf16.msra.mxu1 %v1226_v34  ;;  %v1261_v34 = vld [vmem:[#allocation7 + $0x1d8] sm:$0xff]  }
 0x10e   :  { %1118 = vmatprep.subr.bf16.mxu1 %v1379_v13 }
 0x111   :  { %1119 = vmatpush3.bf16.msra.mxu1 %v1228_v35 }
 0x112   :  { %1120 = vmatprep.subr.bf16.mxu1 %v1379_v13 }
 0x115   :  { %1121 = vmatpush3.bf16.msra.mxu1 %v1230_v36 }
 0x116   :  { %1122 = vmatprep.subr.bf16.mxu1 %v1379_v13 }
 0x119   :  { %1123 = vmatpush3.bf16.msra.mxu1 %v1232_v37 }
 0x11a   :  { %1124 = vmatprep.subr.bf16.mxu1 %v1379_v13 }
 0x11d   :  { %1125 = vmatpush3.bf16.msra.mxu1 %v1234_v39  ;;  %v1262_v39 = vld [vmem:[#allocation7 + $0x1d0] sm:$0xff]  }
 0x11e   :  { %1126 = vmatprep.subr.bf16.mxu1 %v1379_v13 }
 0x121   :  { %1127 = vmatpush3.bf16.msra.mxu1 %v1236_v41  ;;  %v1264_v41 = vld [vmem:[#allocation7 + $0x1c0] sm:$0xff]  }
 0x122   :  { %1128 = vmatprep.subr.bf16.mxu1 %v1379_v13 }
 0x125   :  { %1129 = vmatpush3.bf16.msra.mxu1 %v1238_v43 }
 0x126   :  { %1154 = vmatprep.subr.bf16.mxu1 %v1379_v13 }
 0x1c8   :  { %v1092_v45 = vpop.f32.mrf.mxu1 }
 0x1c9   :  { %v284_v46 = vadd.f32 %v1092_v45, %v949_v44 }
 0x1ca   :  { %v275_v47 = vpop.f32.mrf.mxu1 }
 0x1cb   :  { %v292_v48 = vmax.f32 %v284_v46, 0.0  ;;  %v276_v50 = vadd.f32 %v949_v44, %v275_v47 }
 0x1cc   :  { %v1093_v49 = vpop.f32.mrf.mxu1 }
 0x1cd   :  { %921 = vst [vmem:[#allocation10 + $0x20] sm:$0xff] %v292_v48  ;;  %v287_v51 = vadd.f32 %v1093_v49, %v949_v44  ;;  %v290_v56 = vmax.f32 %v276_v50, 0.0 }
 0x1ce   :  { %v278_v52 = vpop.f32.mrf.mxu1 }
 0x1cf   :  { %v293_v53 = vmax.f32 %v287_v51, 0.0  ;;  %v279_v54 = vadd.f32 %v949_v44, %v278_v52  ;;  %v995_v51 = vld [vmem:[#allocation8 + $0x4] ss:$0 sm:$0xff] }
 0x1d1   :  { %v329_v57 = vpack.c.bf16 %v293_v53, %v292_v48  ;;  %922 = vst [vmem:[#allocation10 + $0x28] sm:$0xff] %v293_v53  ;;  %v291_v58 = vmax.f32 %v279_v54, 0.0 }
 0x1d3   :  { %v1443_v59 = vpack.c.bf16 %v291_v58, %v290_v56  ;;  %1111 = vmatmul.mubr.bf16.vlgmr.msra.gmra.mxu0 %v329_v57 }
 0x1d4   :  { %1135 = vmatpush3.bf16.msra.mxu0 %v1239_v55  ;;  %1150 = vmatprep.mubr.msk.bf16.mxu0 %vm1380_vm1, %v1379_v13 }
 0x1d5   :  { %1131 = vmatmul.mubr.bf16.vlgmr.msra.gmra.mxu1 %v1443_v59  ;;  %1136 = vmatprep.subr.bf16.mxu0 %v1379_v13 }
 0x1d6   :  { %1156 = vmatprep.mubr.msk.bf16.mxu1 %vm1380_vm1, %v1379_v13  ;;  %1155 = vmatpush3.bf16.msra.mxu1 %v1253_v3 }
 0x1d7   :  { %1180 = vmatprep.subr.bf16.mxu1 %v1379_v13 }
 0x1d8   :  { %1137 = vmatpush3.bf16.msra.mxu0 %v1240_v60  ;;  %v996_v60 = vld [vmem:[#allocation8 + $0x5] ss:$0 sm:$0xff] }
 0x1d9   :  { %1138 = vmatprep.subr.bf16.mxu0 %v1379_v13 }
 0x1dc   :  { %1139 = vmatpush3.bf16.msra.mxu0 %v1241_v61 }
 0x1dd   :  { %1140 = vmatprep.subr.bf16.mxu0 %v1379_v13  ;;  %1157 = vmatmul.mubr.msk.bf16.vlgmr.msra.gmra.mxu1 %vm660_vm2, %v1255_v4 }
 0x1de   :  { %1196 = vmatprep.mubr.msk.bf16.mxu1 %vm1380_vm1, %v1379_v13  ;;  %1181 = vmatpush3.bf16.msra.mxu1 %v1257_v30 }
 0x1df   :  { %1182 = vmatprep.subr.bf16.mxu1 %v1379_v13 }
 0x1e0   :  { %1141 = vmatpush3.bf16.msra.mxu0 %v1242_v62 }
 0x1e1   :  { %1142 = vmatprep.subr.bf16.mxu0 %v1379_v13 }
 0x1e2   :  { %1183 = vmatpush3.bf16.msra.mxu1 %v1258_v31 }
 0x1e3   :  { %1184 = vmatprep.subr.bf16.mxu1 %v1379_v13 }
 0x1e4   :  { %1143 = vmatpush3.bf16.msra.mxu0 %v1243_v63 }
 0x1e5   :  { %1144 = vmatprep.subr.bf16.mxu0 %v1379_v13 }
 0x1e6   :  { %1185 = vmatpush3.bf16.msra.mxu1 %v1259_v32 }
 0x1e7   :  { %1186 = vmatprep.subr.bf16.mxu1 %v1379_v13 }
 0x1e8   :  { %1145 = vmatpush3.bf16.msra.mxu0 %v1244_v0 }
 0x1e9   :  { %1146 = vmatprep.subr.bf16.mxu0 %v1379_v13 }
 0x1ea   :  { %1187 = vmatpush3.bf16.msra.mxu1 %v1260_v33 }
 0x1eb   :  { %1188 = vmatprep.subr.bf16.mxu1 %v1379_v13 }
 0x1ec   :  { %1147 = vmatpush3.bf16.msra.mxu0 %v1245_v1 }
 0x1ed   :  { %1148 = vmatprep.subr.bf16.mxu0 %v1379_v13 }
 0x1ee   :  { %1189 = vmatpush3.bf16.msra.mxu1 %v1261_v34 }
 0x1ef   :  { %1190 = vmatprep.subr.bf16.mxu1 %v1379_v13 }
 0x1f0   :  { %1149 = vmatpush3.bf16.msra.mxu0 %v1246_v2 }
 0x1f1   :  { %1160 = vmatprep.subr.bf16.mxu0 %v1379_v13 }
 0x1f2   :  { %1191 = vmatpush3.bf16.msra.mxu1 %v1262_v39 }
 0x1f3   :  { %1192 = vmatprep.subr.bf16.mxu1 %v1379_v13 }
 0x1f6   :  { %1193 = vmatpush3.bf16.msra.mxu1 %v1263_v40 }
 0x1f7   :  { %1194 = vmatprep.subr.bf16.mxu1 %v1379_v13 }
 0x1fa   :  { %1195 = vmatpush3.bf16.msra.mxu1 %v1264_v41 }
 0x293   :  { %v412_v5 = vpop.f32.mrf.mxu0 }
 0x295   :  { %v1112_v6 = vpop.f32.mrf.mxu0  ;;  %v501_v7 = vpop.f32.mrf.mxu1 }
 0x296   :  { %v502_v8 = vadd.f32 %v501_v7, %v412_v5 }
 0x297   :  { %v415_v10 = vpop.f32.mrf.mxu0  ;;  %v1132_v11 = vpop.f32.mrf.mxu1 }
 0x298   :  { %v513_v15 = vadd.f32 %v974_v9, %v502_v8 }
 0x299   :  { %v1113_v12 = vpop.f32.mrf.mxu0  ;;  %v504_v14 = vpop.f32.mrf.mxu1 }
 0x29a   :  { %v505_v16 = vadd.f32 %v504_v14, %v415_v10  ;;  %v515_v19 = vmax.f32 %v513_v15, 0.0 }
 0x29b   :  { %v1133_v17 = vpop.f32.mrf.mxu1 }
 0x29c   :  { %v514_v18 = vadd.f32 %v974_v9, %v505_v16 }
 0x29d   :  { %v698_v35 = vpop.f32.mrf.mxu1 }
 0x29e   :  { %v516_v20 = vmax.f32 %v514_v18, 0.0 }
 0x29f   :  { %v1158_v36 = vpop.f32.mrf.mxu1 }
 0x2a0   :  { %v534_v22 = vpack.c.bf16 %v516_v20, %v515_v19 }
 0x2a1   :  { %v701_v37 = vpop.f32.mrf.mxu1 }
 0x2a2   :  { %1151 = vmatmul.mubr.bf16.vlgmr.msra.gmra.mxu0 %v534_v22 }
 0x2a3   :  { %1161 = vmatpush3.bf16.msra.mxu0 %v1247_v21  ;;  %1176 = vmatprep.mubr.msk.bf16.mxu0 %vm1380_vm1, %v1379_v13  ;;  %v1159_v38 = vpop.f32.mrf.mxu1 }
 0x2a4   :  { %1162 = vmatprep.subr.bf16.mxu0 %v1379_v13 }
 0x2a7   :  { %1163 = vmatpush3.bf16.msra.mxu0 %v1248_v23 }
 0x2a8   :  { %1164 = vmatprep.subr.bf16.mxu0 %v1379_v13 }
 0x2ab   :  { %1165 = vmatpush3.bf16.msra.mxu0 %v1249_v24 }
 0x2ac   :  { %1166 = vmatprep.subr.bf16.mxu0 %v1379_v13 }
 0x2af   :  { %1167 = vmatpush3.bf16.msra.mxu0 %v1250_v25 }
 0x2b0   :  { %1168 = vmatprep.subr.bf16.mxu0 %v1379_v13 }
 0x2b3   :  { %1169 = vmatpush3.bf16.msra.mxu0 %v1251_v26 }
 0x2b4   :  { %1170 = vmatprep.subr.bf16.mxu0 %v1379_v13 }
 0x2b7   :  { %1171 = vmatpush3.bf16.msra.mxu0 %v1252_v27 }
 0x2b8   :  { %1172 = vmatprep.subr.bf16.mxu0 %v1379_v13 }
 0x2bb   :  { %1173 = vmatpush3.bf16.msra.mxu0 %v1254_v28 }
 0x2bc   :  { %1174 = vmatprep.subr.bf16.mxu0 %v1379_v13 }
 0x2bf   :  { %1175 = vmatpush3.bf16.msra.mxu0 %v1256_v29 }
 0x2c2   :  { %1177 = vmatmul.mubr.bf16.vlgmr.msra.gmra.mxu0 %v1443_v59 }
 0x362   :  { %v622_v43 = vpop.f32.mrf.mxu0 }
 0x363   :  { %v623_v44 = vadd.f32 %v975_v42, %v622_v43 }
 0x364   :  { %v1152_v45 = vpop.f32.mrf.mxu0 }
 0x365   :  { %915 = vst [vmem:[#allocation10] sm:$0xff] %v623_v44 }
 0x366   :  { %v625_v46 = vpop.f32.mrf.mxu0 }
 0x367   :  { %v626_v47 = vadd.f32 %v975_v42, %v625_v46 }
 0x368   :  { %v1153_v48 = vpop.f32.mrf.mxu0 }
 0x369   :  { %916 = vst [vmem:[#allocation10 + $0x8] sm:$0xff] %v626_v47 }
 0x382   :  { %v787_v49 = vpop.f32.mrf.mxu0 }
 0x383   :  { %v788_v50 = vadd.f32 %v787_v49, %v698_v35 }
 0x384   :  { %v1178_v52 = vpop.f32.mrf.mxu0 }
 0x385   :  { %v799_v54 = vadd.f32 %v995_v51, %v788_v50 }
 0x386   :  { %v790_v53 = vpop.f32.mrf.mxu0 }
 0x387   :  { %v791_v55 = vadd.f32 %v790_v53, %v701_v37  ;;  %v801_v57 = vmax.f32 %v799_v54, 0.0 }
 0x388   :  { %v1179_v56 = vpop.f32.mrf.mxu0 }
 0x389   :  { %v800_v13 = vadd.f32 %v995_v51, %v791_v55 }
 0x38b   :  { %v802_v58 = vmax.f32 %v800_v13, 0.0 }
 0x38d   :  { %v820_v59 = vpack.c.bf16 %v802_v58, %v801_v57 }
 0x38f   :  { %1197 = vmatmul.mubr.bf16.vlgmr.msra.gmra.mxu1 %v820_v59 }
 0x44f   :  { %v908_v61 = vpop.f32.mrf.mxu1 }
 0x450   :  { %v909_v62 = vadd.f32 %v996_v60, %v908_v61 }
 0x451   :  { %v1198_v63 = vpop.f32.mrf.mxu1 }
 0x452   :  { %918 = vst [vmem:[#allocation10 + $0x10] sm:$0xff] %v909_v62 }
 0x453   :  { %v911_v0 = vpop.f32.mrf.mxu1 }
 0x454   :  { %v912_v1 = vadd.f32 %v996_v60, %v911_v0 }
 0x455   :  { %v1199_v2 = vpop.f32.mrf.mxu1 }
 0x456   :  { %919 = vst [vmem:[#allocation10 + $0x18] sm:$0xff] %v912_v1 }
 0x457   :  { %1356 = shalt.err (!%p1353_p10)
}
 0x458   :  { %s1382_s10 = smov 128   ;;  %s1383_s11 = smov 8  }
 0x459   :  { %934 = dma.vmem_to_hbm [thread:$0]  %s929_s3, 768, %s1485_s4, [#allocation4], %s1382_s10, %s1382_s10, %s1383_s11  }
 0x45a   :  { %1371 = dma.done.wait [#allocation4], 768  }
 0x45b   :  { %1372 = vsyncadd [#allocation4], 4294966528 }
 0x45c   :  { %938 = vsyncpa [#allocation3], 1 }
 0x45d   :  { %939 = vsyncpa [#allocation6], 1 }
 0x45e   :  { %940 = vsyncpa [#allocation9], 1 }
 0x45f   :  { %941 = vsyncpa [#allocation4], 1 }

// kernel: tpu_custom_call.1
= control target key start
LH: loop header
LB: loop body
LE: loop exit
PB: predicated region body
PF: predicated region fallthrough
CT: control target
= control target key end

     0   :  { %9 = vsyncpa [#allocation3], 0  ;;  %s1481_s0 = inlined_call_operand.hbm [shape: bf16[2,16,32], index: 0, kind: input, shape index: {}]   ;;  %s1482_s1 = inlined_call_operand.hbm [shape: bf16[16,16], index: 1, kind: input, shape index: {}]   ;;  %s1483_s2 = inlined_call_operand.hbm [shape: bf16[8,128,128], index: 2, kind: input, shape index: {}]   ;;  %s1484_s3 = inlined_call_operand.hbm [shape: f32[8,128], index: 3, kind: input, shape index: {}]   ;;  %s1485_s4 = inlined_call_operand.hbm [shape: f32[3,16,128], index: 4, kind: output, shape index: {}]  }
   0x1   :  { %10 = vsyncpa [#allocation6], 0 }
   0x2   :  { %11 = vsyncpa [#allocation9], 0 }
   0x3   :  { %12 = vsyncpa [#allocation4], 0  ;;  %s1373_s15 = smov [#allocation5]   ;;  %s1374_s17 = smov [#allocation2]  }
   0x4   :  { %s30_s16 = sshll.u32 %s1373_s15, 4  ;;  %s18_s18 = sshll.u32 %s1374_s17, 4  ;;  %s31_s16 = int_to_ptr.vmem [resolvable:$true] %s30_s16  ;;  %s19_s18 = int_to_ptr.vmem [resolvable:$true] %s18_s18 }
   0x5   :  { %s1273_s19 = scalar_lea.vmem %s31_s16, 128  ;;  %p1278_p1 = scmp.lt.s32.totalorder %s31_s16, %s31_s16 }
   0x6   :  { %p1274_p0 = scmp.ne.s32.totalorder %s31_s16, %s1273_s19  ;;  %p1279_p2 = scmp.lt.s32.totalorder %s1273_s19, %s1273_s19 }
   0x8   :  { %p1280_p3 = por %p1279_p2, %p1278_p1 }
   0xa   :  { %p1281_p4 = pnand %p1280_p3, %p1274_p0 }
   0xc   :  { %1284 = shalt.err (!%p1281_p4)
}
   0xd   :  { %s1375_s20 = smov 64   ;;  %s1376_s21 = smov 4  }
   0xe   :  { %36 = dma.hbm_to_vmem [thread:$0]  %s1482_s1, 128, %s31_s16, [#allocation6], %s1375_s20, %s1375_s20, %s1376_s21  }
   0xf   :  { %s1293_s24 = scalar_lea.vmem %s19_s18, 256  ;;  %p1298_p6 = scmp.lt.s32.totalorder %s19_s18, %s19_s18 }
  0x10   :  { %p1294_p5 = scmp.ne.s32.totalorder %s19_s18, %s1293_s24  ;;  %p1299_p7 = scmp.lt.s32.totalorder %s1293_s24, %s1293_s24 }
  0x12   :  { %p1300_p8 = por %p1299_p7, %p1298_p6 }
  0x14   :  { %p1301_p9 = pnand %p1300_p8, %p1294_p5 }
  0x16   :  { %1304 = shalt.err (!%p1301_p9)
}
  0x17   :  { %24 = dma.hbm_to_vmem [thread:$0]  %s1481_s0, 256, %s19_s18, [#allocation3], %s1375_s20, %s1375_s20, %s1376_s21  }
  0x18   :  { %s1377_s27 = smov [#allocation7]   ;;  %s1378_s29 = smov [#allocation8]  }
  0x19   :  { %s42_s28 = sshll.u32 %s1377_s27, 4  ;;  %s55_s30 = sshll.u32 %s1378_s29, 4  ;;  %s43_s28 = int_to_ptr.vmem [resolvable:$true] %s42_s28  ;;  %s56_s30 = int_to_ptr.vmem [resolvable:$true] %s55_s30 }
  0x1a   :  { %s1313_s5 = scalar_lea.vmem %s43_s28, 8192  ;;  %p1318_p11 = scmp.lt.s32.totalorder %s43_s28, %s43_s28 }
  0x1b   :  { %p1314_p10 = scmp.ne.s32.totalorder %s43_s28, %s1313_s5  ;;  %p1319_p12 = scmp.lt.s32.totalorder %s1313_s5, %s1313_s5 }
  0x1d   :  { %p1320_p13 = por %p1319_p12, %p1318_p11 }
  0x1f   :  { %p1321_p0 = pnand %p1320_p13, %p1314_p10 }
  0x21   :  { %1324 = shalt.err (!%p1321_p0)
}
  0x22   :  { %48 = dma.hbm_to_vmem [thread:$0]  %s1483_s2, 8192, %s43_s28, [#allocation6], %s1375_s20, %s1375_s20, %s1376_s21  }
  0x23   :  { %s1333_s7 = scalar_lea.vmem %s56_s30, 128  ;;  %p1338_p2 = scmp.lt.s32.totalorder %s56_s30, %s56_s30 }
  0x24   :  { %p1334_p1 = scmp.ne.s32.totalorder %s56_s30, %s1333_s7  ;;  %p1339_p3 = scmp.lt.s32.totalorder %s1333_s7, %s1333_s7 }
  0x26   :  { %p1340_p4 = por %p1339_p3, %p1338_p2 }
  0x28   :  { %p1341_p5 = pnand %p1340_p4, %p1334_p1 }
  0x2a   :  { %1344 = shalt.err (!%p1341_p5)
}
  0x2b   :  { %58 = dma.hbm_to_vmem [thread:$0]  %s1484_s3, 128, %s56_s30, [#allocation9]  }
  0x2c   :  { %1365 = dma.done.wait [#allocation3], 256  }
  0x2d   :  { %1366 = vsyncadd [#allocation3], 4294967040 }
  0x2e   :  { %1367 = dma.done.wait [#allocation6], 8320  }
  0x2f   :  { %1368 = vsyncadd [#allocation6], 4294958976 }
  0x30   :  { %1369 = dma.done.wait [#allocation9], 128  }
  0x31   :  { %1370 = vsyncadd [#allocation9], 4294967168  ;;  %v1211_v0 = vld [vmem:[#allocation7 + $0x8] sm:$0xff]   ;;  %v1212_v1 = vld [vmem:[#allocation7] sm:$0xff]   ;;  %vm109_vm0 = vcmask 261120   ;;  %v1379_v13 = vmov 0.0  }
  0x32   :  { %1066 = vmatprep.subr.bf16.mxu0 %v1211_v0  ;;  %v1213_v2 = vld [vmem:[#allocation2] sm:$0xff]   ;;  %v1215_v3 = vld [vmem:[#allocation7 + $0x78] sm:$0xff]   ;;  %v1216_v4 = vld [vmem:[#allocation7 + $0x70] sm:$0xff]   ;;  %vm1380_vm1 = vmmov 0   ;;  %vm660_vm2 = vcmask 130048   ;;  %s1381_s2 = smov [#allocation10]  }
  0x33   :  { %1067 = vmatpush3.bf16.msra.mxu0 %v1211_v0  ;;  %1070 = vmatprep.mubr.msk.bf16.mxu0 %vm109_vm0, %v1213_v2  ;;  %v1214_v5 = vld [vmem:[#allocation2 + $0x8] sm:$0xff]   ;;  %v1217_v6 = vld [vmem:[#allocation7 + $0x68] sm:$0xff]   ;;  %v1218_v7 = vld [vmem:[#allocation7 + $0x60] sm:$0xff]   ;;  %s928_s3 = sshll.u32 %s1381_s2, 4  ;;  %s929_s3 = int_to_ptr.vmem [resolvable:$true] %s928_s3 }
  0x34   :  { %1068 = vmatprep.subr.bf16.mxu0 %v1212_v1  ;;  %1074 = vmatprep.subr.bf16.mxu1 %v1215_v3  ;;  %v1219_v8 = vld [vmem:[#allocation7 + $0x58] sm:$0xff]   ;;  %v1220_v9 = vld [vmem:[#allocation7 + $0x50] sm:$0xff]   ;;  %v1221_v10 = vld [vmem:[#allocation7 + $0x48] sm:$0xff]   ;;  %s1345_s9 = scalar_lea.vmem %s929_s3, 768  ;;  %p1350_p7 = scmp.lt.s32.totalorder %s929_s3, %s929_s3 }
  0x35   :  { %1075 = vmatpush3.bf16.msra.mxu1 %v1215_v3  ;;  %v1222_v11 = vld [vmem:[#allocation7 + $0x40] sm:$0xff]   ;;  %v1223_v12 = vld [vmem:[#allocation7 + $0xf8] sm:$0xff]   ;;  %v1225_v14 = vld [vmem:[#allocation7 + $0xf0] sm:$0xff]   ;;  %p1346_p6 = scmp.ne.s32.totalorder %s929_s3, %s1345_s9  ;;  %p1351_p8 = scmp.lt.s32.totalorder %s1345_s9, %s1345_s9 }
  0x36   :  { %1076 = vmatprep.subr.bf16.mxu1 %v1216_v4  ;;  %v1227_v15 = vld [vmem:[#allocation7 + $0xe8] sm:$0xff]   ;;  %v1229_v16 = vld [vmem:[#allocation7 + $0xe0] sm:$0xff]   ;;  %v1231_v17 = vld [vmem:[#allocation7 + $0xd8] sm:$0xff]  }
  0x37   :  { %1069 = vmatpush3.bf16.msra.mxu0 %v1212_v1  ;;  %v942_v20 = vld [vmem:[#allocation8] ss:$0 sm:$0xff]  ;;  %v1224_v32 = vld [vmem:[#allocation7 + $0xb8] sm:$0xff]   ;;  %v1226_v34 = vld [vmem:[#allocation7 + $0xb0] sm:$0xff]   ;;  %p1352_p9 = por %p1351_p8, %p1350_p7 }
  0x38   :  { %1094 = vmatprep.subr.bf16.mxu0 %v1379_v13  ;;  %v1228_v35 = vld [vmem:[#allocation7 + $0xa8] sm:$0xff]   ;;  %v1230_v36 = vld [vmem:[#allocation7 + $0xa0] sm:$0xff]   ;;  %v1232_v37 = vld [vmem:[#allocation7 + $0x98] sm:$0xff]  }
  0x39   :  { %1077 = vmatpush3.bf16.msra.mxu1 %v1216_v4  ;;  %v1233_v38 = vld [vmem:[#allocation7 + $0xd0] sm:$0xff]   ;;  %v1235_v40 = vld [vmem:[#allocation7 + $0xc8] sm:$0xff]   ;;  %v1237_v42 = vld [vmem:[#allocation7 + $0xc0] sm:$0xff]   ;;  %p1353_p10 = pnand %p1352_p9, %p1346_p6 }
  0x3a   :  { %1071 = vmatmul.mubr.msk.bf16.vlgmr.msra.gmra.mxu0 %vm109_vm0, %v1214_v5  ;;  %1078 = vmatprep.subr.bf16.mxu1 %v1217_v6  ;;  %v1234_v39 = vld [vmem:[#allocation7 + $0x90] sm:$0xff]   ;;  %v1236_v41 = vld [vmem:[#allocation7 + $0x88] sm:$0xff]   ;;  %v1238_v43 = vld [vmem:[#allocation7 + $0x80] sm:$0xff]  }
  0x3b   :  { %1095 = vmatpush3.bf16.msra.mxu0 %v1223_v12  ;;  %1110 = vmatprep.mubr.msk.bf16.mxu0 %vm1380_vm1, %v1379_v13  ;;  %v949_v44 = vld [vmem:[#allocation8 + $0x1] ss:$0 sm:$0xff]  ;;  %v1239_v55 = vld [vmem:[#allocation7 + $0x138] sm:$0xff]   ;;  %v1240_v60 = vld [vmem:[#allocation7 + $0x130] sm:$0xff]  }
  0x3c   :  { %1096 = vmatprep.subr.bf16.mxu0 %v1379_v13  ;;  %v1241_v61 = vld [vmem:[#allocation7 + $0x128] sm:$0xff]   ;;  %v1242_v62 = vld [vmem:[#allocation7 + $0x120] sm:$0xff]   ;;  %v1243_v63 = vld [vmem:[#allocation7 + $0x118] sm:$0xff]  }
  0x3d   :  { %1079 = vmatpush3.bf16.msra.mxu1 %v1217_v6  ;;  %v1244_v0 = vld [vmem:[#allocation7 + $0x110] sm:$0xff]   ;;  %v1245_v1 = vld [vmem:[#allocation7 + $0x108] sm:$0xff]   ;;  %v1246_v2 = vld [vmem:[#allocation7 + $0x100] sm:$0xff]  }
  0x3e   :  { %1080 = vmatprep.subr.bf16.mxu1 %v1218_v7  ;;  %v1253_v3 = vld [vmem:[#allocation7 + $0x180] sm:$0xff]   ;;  %v1255_v4 = vld [vmem:[#allocation5] sm:$0xff]  }
  0x3f   :  { %1097 = vmatpush3.bf16.msra.mxu0 %v1225_v14 }
  0x40   :  { %1098 = vmatprep.subr.bf16.mxu0 %v1379_v13 }
  0x41   :  { %1081 = vmatpush3.bf16.msra.mxu1 %v1218_v7 }
  0x42   :  { %1082 = vmatprep.subr.bf16.mxu1 %v1219_v8 }
  0x43   :  { %1099 = vmatpush3.bf16.msra.mxu0 %v1227_v15 }
  0x44   :  { %1100 = vmatprep.subr.bf16.mxu0 %v1379_v13 }
  0x45   :  { %1083 = vmatpush3.bf16.msra.mxu1 %v1219_v8 }
  0x46   :  { %1084 = vmatprep.subr.bf16.mxu1 %v1220_v9 }
  0x47   :  { %1101 = vmatpush3.bf16.msra.mxu0 %v1229_v16 }
  0x48   :  { %1102 = vmatprep.subr.bf16.mxu0 %v1379_v13 }
  0x49   :  { %1085 = vmatpush3.bf16.msra.mxu1 %v1220_v9  ;;  %v974_v9 = vld [vmem:[#allocation8 + $0x2] ss:$0 sm:$0xff] }
  0x4a   :  { %1086 = vmatprep.subr.bf16.mxu1 %v1221_v10 }
  0x4b   :  { %1103 = vmatpush3.bf16.msra.mxu0 %v1231_v17 }
  0x4c   :  { %1104 = vmatprep.subr.bf16.mxu0 %v1379_v13 }
  0x4d   :  { %1087 = vmatpush3.bf16.msra.mxu1 %v1221_v10 }
  0x4e   :  { %1088 = vmatprep.subr.bf16.mxu1 %v1222_v11 }
  0x4f   :  { %1105 = vmatpush3.bf16.msra.mxu0 %v1233_v38 }
  0x50   :  { %1106 = vmatprep.subr.bf16.mxu0 %v1379_v13 }
  0x51   :  { %1089 = vmatpush3.bf16.msra.mxu1 %v1222_v11 }
  0x52   :  { %1114 = vmatprep.subr.bf16.mxu1 %v1379_v13 }
  0x53   :  { %1107 = vmatpush3.bf16.msra.mxu0 %v1235_v40  ;;  %v1263_v40 = vld [vmem:[#allocation7 + $0x1c8] sm:$0xff]  }
  0x54   :  { %1108 = vmatprep.subr.bf16.mxu0 %v1379_v13 }
  0x57   :  { %1109 = vmatpush3.bf16.msra.mxu0 %v1237_v42  ;;  %v975_v42 = vld [vmem:[#allocation8 + $0x3] ss:$0 sm:$0xff] }
  0x58   :  { %1134 = vmatprep.subr.bf16.mxu0 %v1379_v13 }
  0xfa   :  { %v1072_v18 = vpop.f32.mrf.mxu0 }
  0xfb   :  { %v159_v24 = vadd.f32 %v1072_v18, %v942_v20 }
  0xfc   :  { %v150_v19 = vpop.f32.mrf.mxu0 }
  0xfd   :  { %v151_v22 = vadd.f32 %v942_v20, %v150_v19  ;;  %v167_v30 = vmax.f32 %v159_v24, 0.0  ;;  %v1249_v24 = vld [vmem:[#allocation7 + $0x168] sm:$0xff]  }
  0xfe   :  { %v1073_v21 = vpop.f32.mrf.mxu0 }
  0xff   :  { %v162_v23 = vadd.f32 %v1073_v21, %v942_v20  ;;  %v165_v28 = vmax.f32 %v151_v22, 0.0  ;;  %v1247_v21 = vld [vmem:[#allocation7 + $0x178] sm:$0xff]  }
 0x100   :  { %v153_v25 = vpop.f32.mrf.mxu0 }
 0x101   :  { %v154_v26 = vadd.f32 %v942_v20, %v153_v25  ;;  %v168_v27 = vmax.f32 %v162_v23, 0.0  ;;  %v1248_v23 = vld [vmem:[#allocation7 + $0x170] sm:$0xff]   ;;  %v1250_v25 = vld [vmem:[#allocation7 + $0x160] sm:$0xff]  }
 0x103   :  { %v166_v29 = vmax.f32 %v154_v26, 0.0  ;;  %v187_v33 = vpack.c.bf16 %v168_v27, %v167_v30  ;;  %v1251_v26 = vld [vmem:[#allocation7 + $0x158] sm:$0xff]   ;;  %v1252_v27 = vld [vmem:[#allocation7 + $0x150] sm:$0xff]  }
 0x104   :  { %v1257_v30 = vld [vmem:[#allocation7 + $0x1f8] sm:$0xff]  }
 0x105   :  { %v186_v31 = vpack.c.bf16 %v166_v29, %v165_v28  ;;  %v1254_v28 = vld [vmem:[#allocation7 + $0x148] sm:$0xff]   ;;  %v1256_v29 = vld [vmem:[#allocation7 + $0x140] sm:$0xff]  }
 0x107   :  { %1090 = vmatprep.mubr.bf16.mxu1 %v186_v31  ;;  %v1258_v31 = vld [vmem:[#allocation7 + $0x1f0] sm:$0xff]  }
 0x108   :  { %1091 = vmatmul.mubr.bf16.vlgmr.msra.gmra.mxu1 %v187_v33  ;;  %v1260_v33 = vld [vmem:[#allocation7 + $0x1e0] sm:$0xff]  }
 0x109   :  { %1115 = vmatpush3.bf16.msra.mxu1 %v1224_v32  ;;  %1130 = vmatprep.mubr.msk.bf16.mxu1 %vm1380_vm1, %v1379_v13  ;;  %v1259_v32 = vld [vmem:[#allocation7 + $0x1e8] sm:$0xff]  }
 0x10a   :  { %1116 = vmatprep.subr.bf16.mxu1 %v1379_v13 }
 0x10d   :  { %1117 = vmatpush3.bf16.msra.mxu1 %v1226_v34  ;;  %v1261_v34 = vld [vmem:[#allocation7 + $0x1d8] sm:$0xff]  }
 0x10e   :  { %1118 = vmatprep.subr.bf16.mxu1 %v1379_v13 }
 0x111   :  { %1119 = vmatpush3.bf16.msra.mxu1 %v1228_v35 }
 0x112   :  { %1120 = vmatprep.subr.bf16.mxu1 %v1379_v13 }
 0x115   :  { %1121 = vmatpush3.bf16.msra.mxu1 %v1230_v36 }
 0x116   :  { %1122 = vmatprep.subr.bf16.mxu1 %v1379_v13 }
 0x119   :  { %1123 = vmatpush3.bf16.msra.mxu1 %v1232_v37 }
 0x11a   :  { %1124 = vmatprep.subr.bf16.mxu1 %v1379_v13 }
 0x11d   :  { %1125 = vmatpush3.bf16.msra.mxu1 %v1234_v39  ;;  %v1262_v39 = vld [vmem:[#allocation7 + $0x1d0] sm:$0xff]  }
 0x11e   :  { %1126 = vmatprep.subr.bf16.mxu1 %v1379_v13 }
 0x121   :  { %1127 = vmatpush3.bf16.msra.mxu1 %v1236_v41  ;;  %v1264_v41 = vld [vmem:[#allocation7 + $0x1c0] sm:$0xff]  }
 0x122   :  { %1128 = vmatprep.subr.bf16.mxu1 %v1379_v13 }
 0x125   :  { %1129 = vmatpush3.bf16.msra.mxu1 %v1238_v43 }
 0x126   :  { %1154 = vmatprep.subr.bf16.mxu1 %v1379_v13 }
 0x1c8   :  { %v1092_v45 = vpop.f32.mrf.mxu1 }
 0x1c9   :  { %v284_v46 = vadd.f32 %v1092_v45, %v949_v44 }
 0x1ca   :  { %v275_v47 = vpop.f32.mrf.mxu1 }
 0x1cb   :  { %v292_v48 = vmax.f32 %v284_v46, 0.0  ;;  %v276_v50 = vadd.f32 %v949_v44, %v275_v47 }
 0x1cc   :  { %v1093_v49 = vpop.f32.mrf.mxu1 }
 0x1cd   :  { %921 = vst [vmem:[#allocation10 + $0x20] sm:$0xff] %v292_v48  ;;  %v287_v51 = vadd.f32 %v1093_v49, %v949_v44  ;;  %v290_v56 = vmax.f32 %v276_v50, 0.0 }
 0x1ce   :  { %v278_v52 = vpop.f32.mrf.mxu1 }
 0x1cf   :  { %v293_v53 = vmax.f32 %v287_v51, 0.0  ;;  %v279_v54 = vadd.f32 %v949_v44, %v278_v52  ;;  %v995_v51 = vld [vmem:[#allocation8 + $0x4] ss:$0 sm:$0xff] }
 0x1d1   :  { %v329_v57 = vpack.c.bf16 %v293_v53, %v292_v48  ;;  %922 = vst [vmem:[#allocation10 + $0x28] sm:$0xff] %v293_v53  ;;  %v291_v58 = vmax.f32 %v279_v54, 0.0 }
 0x1d3   :  { %v1443_v59 = vpack.c.bf16 %v291_v58, %v290_v56  ;;  %1111 = vmatmul.mubr.bf16.vlgmr.msra.gmra.mxu0 %v329_v57 }
 0x1d4   :  { %1135 = vmatpush3.bf16.msra.mxu0 %v1239_v55  ;;  %1150 = vmatprep.mubr.msk.bf16.mxu0 %vm1380_vm1, %v1379_v13 }
 0x1d5   :  { %1131 = vmatmul.mubr.bf16.vlgmr.msra.gmra.mxu1 %v1443_v59  ;;  %1136 = vmatprep.subr.bf16.mxu0 %v1379_v13 }
 0x1d6   :  { %1156 = vmatprep.mubr.msk.bf16.mxu1 %vm1380_vm1, %v1379_v13  ;;  %1155 = vmatpush3.bf16.msra.mxu1 %v1253_v3 }
 0x1d7   :  { %1180 = vmatprep.subr.bf16.mxu1 %v1379_v13 }
 0x1d8   :  { %1137 = vmatpush3.bf16.msra.mxu0 %v1240_v60  ;;  %v996_v60 = vld [vmem:[#allocation8 + $0x5] ss:$0 sm:$0xff] }
 0x1d9   :  { %1138 = vmatprep.subr.bf16.mxu0 %v1379_v13 }
 0x1dc   :  { %1139 = vmatpush3.bf16.msra.mxu0 %v1241_v61 }
 0x1dd   :  { %1140 = vmatprep.subr.bf16.mxu0 %v1379_v13  ;;  %1157 = vmatmul.mubr.msk.bf16.vlgmr.msra.gmra.mxu1 %vm660_vm2, %v1255_v4 }
 0x1de   :  { %1196 = vmatprep.mubr.msk.bf16.mxu1 %vm1380_vm1, %v1379_v13  ;;  %1181 = vmatpush3.bf16.msra.mxu1 %v1257_v30 }
 0x1df   :  { %1182 = vmatprep.subr.bf16.mxu1 %v1379_v13 }
 0x1e0   :  { %1141 = vmatpush3.bf16.msra.mxu0 %v1242_v62 }
 0x1e1   :  { %1142 = vmatprep.subr.bf16.mxu0 %v1379_v13 }
 0x1e2   :  { %1183 = vmatpush3.bf16.msra.mxu1 %v1258_v31 }
 0x1e3   :  { %1184 = vmatprep.subr.bf16.mxu1 %v1379_v13 }
 0x1e4   :  { %1143 = vmatpush3.bf16.msra.mxu0 %v1243_v63 }
 0x1e5   :  { %1144 = vmatprep.subr.bf16.mxu0 %v1379_v13 }
 0x1e6   :  { %1185 = vmatpush3.bf16.msra.mxu1 %v1259_v32 }
 0x1e7   :  { %1186 = vmatprep.subr.bf16.mxu1 %v1379_v13 }
 0x1e8   :  { %1145 = vmatpush3.bf16.msra.mxu0 %v1244_v0 }
 0x1e9   :  { %1146 = vmatprep.subr.bf16.mxu0 %v1379_v13 }
 0x1ea   :  { %1187 = vmatpush3.bf16.msra.mxu1 %v1260_v33 }
 0x1eb   :  { %1188 = vmatprep.subr.bf16.mxu1 %v1379_v13 }
 0x1ec   :  { %1147 = vmatpush3.bf16.msra.mxu0 %v1245_v1 }
 0x1ed   :  { %1148 = vmatprep.subr.bf16.mxu0 %v1379_v13 }
 0x1ee   :  { %1189 = vmatpush3.bf16.msra.mxu1 %v1261_v34 }
 0x1ef   :  { %1190 = vmatprep.subr.bf16.mxu1 %v1379_v13 }
 0x1f0   :  { %1149 = vmatpush3.bf16.msra.mxu0 %v1246_v2 }
 0x1f1   :  { %1160 = vmatprep.subr.bf16.mxu0 %v1379_v13 }
 0x1f2   :  { %1191 = vmatpush3.bf16.msra.mxu1 %v1262_v39 }
 0x1f3   :  { %1192 = vmatprep.subr.bf16.mxu1 %v1379_v13 }
 0x1f6   :  { %1193 = vmatpush3.bf16.msra.mxu1 %v1263_v40 }
 0x1f7   :  { %1194 = vmatprep.subr.bf16.mxu1 %v1379_v13 }
 0x1fa   :  { %1195 = vmatpush3.bf16.msra.mxu1 %v1264_v41 }
 0x293   :  { %v412_v5 = vpop.f32.mrf.mxu0 }
 0x295   :  { %v1112_v6 = vpop.f32.mrf.mxu0  ;;  %v501_v7 = vpop.f32.mrf.mxu1 }
 0x296   :  { %v502_v8 = vadd.f32 %v501_v7, %v412_v5 }
 0x297   :  { %v415_v10 = vpop.f32.mrf.mxu0  ;;  %v1132_v11 = vpop.f32.mrf.mxu1 }
 0x298   :  { %v513_v15 = vadd.f32 %v974_v9, %v502_v8 }
 0x299   :  { %v1113_v12 = vpop.f32.mrf.mxu0  ;;  %v504_v14 = vpop.f32.mrf.mxu1 }
 0x29a   :  { %v505_v16 = vadd.f32 %v504_v14, %v415_v10  ;;  %v515_v19 = vmax.f32 %v513_v15, 0.0 }
 0x29b   :  { %v1133_v17 = vpop.f32.mrf.mxu1 }
 0x29c   :  { %v514_v18 = vadd.f32 %v974_v9, %v505_v16 }
 0x29d   :  { %v698_v35 = vpop.f32.mrf.mxu1 }
 0x29e   :  { %v516_v20 = vmax.f32 %v514_v18, 0.0 }
 0x29f   :  { %v1158_v36 = vpop.f32.mrf.mxu1 }
 0x2a0   :  { %v534_v22 = vpack.c.bf16 %v516_v20, %v515_v19 }
 0x2a1   :  { %v701_v37 = vpop.f32.mrf.mxu1 }
 0x2a2   :  { %1151 = vmatmul.mubr.bf16.vlgmr.msra.gmra.mxu0 %v534_v22 }
 0x2a3   :  { %1161 = vmatpush3.bf16.msra.mxu0 %v1247_v21  ;;  %1176 = vmatprep.mubr.msk.bf16.mxu0 %vm1380_vm1, %v1379_v13  ;;  %v1159_v38 = vpop.f32.mrf.mxu1 }
 0x2a4   :  { %1162 = vmatprep.subr.bf16.mxu0 %v1379_v13 }
 0x2a7   :  { %1163 = vmatpush3.bf16.msra.mxu0 %v1248_v23 }
 0x2a8   :  { %1164 = vmatprep.subr.bf16.mxu0 %v1379_v13 }
 0x2ab   :  { %1165 = vmatpush3.bf16.msra.mxu0 %v1249_v24 }
 0x2ac   :  { %1166 = vmatprep.subr.bf16.mxu0 %v1379_v13 }
 0x2af   :  { %1167 = vmatpush3.bf16.msra.mxu0 %v1250_v25 }
 0x2b0   :  { %1168 = vmatprep.subr.bf16.mxu0 %v1379_v13 }
 0x2b3   :  { %1169 = vmatpush3.bf16.msra.mxu0 %v1251_v26 }
 0x2b4   :  { %1170 = vmatprep.subr.bf16.mxu0 %v1379_v13 }
 0x2b7   :  { %1171 = vmatpush3.bf16.msra.mxu0 %v1252_v27 }
 0x2b8   :  { %1172 = vmatprep.subr.bf16.mxu0 %v1379_v13 }
 0x2bb   :  { %1173 = vmatpush3.bf16.msra.mxu0 %v1254_v28 }
 0x2bc   :  { %1174 = vmatprep.subr.bf16.mxu0 %v1379_v13 }
 0x2bf   :  { %1175 = vmatpush3.bf16.msra.mxu0 %v1256_v29 }
 0x2c2   :  { %1177 = vmatmul.mubr.bf16.vlgmr.msra.gmra.mxu0 %v1443_v59 }
 0x362   :  { %v622_v43 = vpop.f32.mrf.mxu0 }
 0x363   :  { %v623_v44 = vadd.f32 %v975_v42, %v622_v43 }
 0x364   :  { %v1152_v45 = vpop.f32.mrf.mxu0 }
 0x365   :  { %915 = vst [vmem:[#allocation10] sm:$0xff] %v623_v44 }
 0x366   :  { %v625_v46 = vpop.f32.mrf.mxu0 }
 0x367   :  { %v626_v47 = vadd.f32 %v975_v42, %v625_v46 }
 0x368   :  { %v1153_v48 = vpop.f32.mrf.mxu0 }
 0x369   :  { %916 = vst [vmem:[#allocation10 + $0x8] sm:$0xff] %v626_v47 }
 0x382   :  { %v787_v49 = vpop.f32.mrf.mxu0 }
 0x383   :  { %v788_v50 = vadd.f32 %v787_v49, %v698_v35 }
 0x384   :  { %v1178_v52 = vpop.f32.mrf.mxu0 }
 0x385   :  { %v799_v54 = vadd.f32 %v995_v51, %v788_v50 }
 0x386   :  { %v790_v53 = vpop.f32.mrf.mxu0 }
 0x387   :  { %v791_v55 = vadd.f32 %v790_v53, %v701_v37  ;;  %v801_v57 = vmax.f32 %v799_v54, 0.0 }
 0x388   :  { %v1179_v56 = vpop.f32.mrf.mxu0 }
 0x389   :  { %v800_v13 = vadd.f32 %v995_v51, %v791_v55 }
 0x38b   :  { %v802_v58 = vmax.f32 %v800_v13, 0.0 }
 0x38d   :  { %v820_v59 = vpack.c.bf16 %v802_v58, %v801_v57 }
 0x38f   :  { %1197 = vmatmul.mubr.bf16.vlgmr.msra.gmra.mxu1 %v820_v59 }
 0x44f   :  { %v908_v61 = vpop.f32.mrf.mxu1 }
 0x450   :  { %v909_v62 = vadd.f32 %v996_v60, %v908_v61 }
 0x451   :  { %v1198_v63 = vpop.f32.mrf.mxu1 }
 0x452   :  { %918 = vst [vmem:[#allocation10 + $0x10] sm:$0xff] %v909_v62 }
 0x453   :  { %v911_v0 = vpop.f32.mrf.mxu1 }
 0x454   :  { %v912_v1 = vadd.f32 %v996_v60, %v911_v0 }
 0x455   :  { %v1199_v2 = vpop.f32.mrf.mxu1 }
 0x456   :  { %919 = vst [vmem:[#allocation10 + $0x18] sm:$0xff] %v912_v1 }
 0x457   :  { %1356 = shalt.err (!%p1353_p10)
}
 0x458   :  { %s1382_s10 = smov 128   ;;  %s1383_s11 = smov 8  }
 0x459   :  { %934 = dma.vmem_to_hbm [thread:$0]  %s929_s3, 768, %s1485_s4, [#allocation4], %s1382_s10, %s1382_s10, %s1383_s11  }
 0x45a   :  { %1371 = dma.done.wait [#allocation4], 768  }
 0x45b   :  { %1372 = vsyncadd [#allocation4], 4294966528 }
 0x45c   :  { %938 = vsyncpa [#allocation3], 1 }
 0x45d   :  { %939 = vsyncpa [#allocation6], 1 }
 0x45e   :  { %940 = vsyncpa [#allocation9], 1 }
 0x45f   :  { %941 = vsyncpa [#allocation4], 1 }

</bundles_post_ra>
